<compile_context>
chip_gen: v7x
topology: tpu7x:2x2x1
jax: 0.10.0
libtpu: 0.0.40
codegen_flags: <defaults>
</compile_context>

<pallas_src>
import functools

import jax
import jax.numpy as jnp
from jax.experimental import pallas as pl
from jax.experimental.pallas import tpu as pltpu

EPS = 1e-12                      # BERT-style LayerNorm eps
TARGET_ROW_TILE = 512            # multiple of 8 / 128 / 256 (v5e/v6e/v7x MXU)
VMEM_LIMIT_BYTES = 64 * 1024 * 1024


def _compiler_params():
    return pltpu.CompilerParams(
        dimension_semantics=("parallel",),
        vmem_limit_bytes=VMEM_LIMIT_BYTES,
    )


def _tile_rows(M):
    """Pick a row tile and padded row count. tm == M for small inputs."""
    tm = TARGET_ROW_TILE if M >= TARGET_ROW_TILE else M
    Mp = ((M + tm - 1) // tm) * tm
    return tm, Mp


def _pad_rows(x, Mp):
    if x.shape[0] == Mp:
        return x
    return jnp.pad(x, ((0, Mp - x.shape[0]), (0, 0)))


def _ln(x, g, b):
    """f32 LayerNorm over the last axis (x already f32)."""
    mu = jnp.mean(x, axis=-1, keepdims=True)
    var = jnp.mean((x - mu) ** 2, axis=-1, keepdims=True)
    return (x - mu) * jax.lax.rsqrt(var + EPS) * g + b


# ---------------------------------------------------------------------------
# Kernels
# ---------------------------------------------------------------------------
def _emb_ln_mask_kernel(x_ref, m_ref, g_ref, b_ref, o_ref):
    x = x_ref[...].astype(jnp.float32)
    y = _ln(x, g_ref[...], b_ref[...])
    y = y * m_ref[...]                       # attention-mask fused into LN
    o_ref[...] = y.astype(o_ref.dtype)


def _in_proj_gate_kernel(h_ref, wx1_ref, wx2_ref, wv_ref,
                         bx1_ref, bx2_ref, bv_ref, xv_ref, x2_ref):
    h = h_ref[...]                           # bf16
    x1 = jnp.dot(h, wx1_ref[...], preferred_element_type=jnp.float32) + bx1_ref[...]
    x2 = jnp.dot(h, wx2_ref[...], preferred_element_type=jnp.float32) + bx2_ref[...]
    v = jnp.dot(h, wv_ref[...], preferred_element_type=jnp.float32) + bv_ref[...]
    xv_ref[...] = (x1 * v).astype(xv_ref.dtype)      # input gate fused
    x2_ref[...] = x2.astype(x2_ref.dtype)


def _gate_out_residual_ln_kernel(x2_ref, conv_ref, h_ref, w_ref, b_ref,
                                 g_ref, beta_ref, o_ref):
    # output gate fused into the out-projection matmul
    gated = (x2_ref[...].astype(jnp.float32)
             * conv_ref[...].astype(jnp.float32)).astype(jnp.bfloat16)
    y = jnp.dot(gated, w_ref[...], preferred_element_type=jnp.float32) + b_ref[...]
    x = h_ref[...].astype(jnp.float32) + y           # residual fused
    o_ref[...] = _ln(x, g_ref[...], beta_ref[...]).astype(o_ref.dtype)


def _mlp_residual_ln_kernel(h_ref, w1_ref, b1_ref, w2_ref, b2_ref,
                            g_ref, beta_ref, o_ref):
    h = h_ref[...]                                   # bf16
    m = jnp.dot(h, w1_ref[...], preferred_element_type=jnp.float32) + b1_ref[...]
    m = jax.nn.gelu(m).astype(jnp.bfloat16)          # intermediate stays on-chip
    y = jnp.dot(m, w2_ref[...], preferred_element_type=jnp.float32) + b2_ref[...]
    x = h.astype(jnp.float32) + y                    # residual fused
    o_ref[...] = _ln(x, g_ref[...], beta_ref[...]).astype(o_ref.dtype)


# ---------------------------------------------------------------------------
# Wrappers
# ---------------------------------------------------------------------------
def emb_layernorm_mask(x, mask, g, b):
    """LN(x) * mask.  x: [M, D] f32, mask: [M, 1] f32 -> bf16 [M, D]."""
    M, D = x.shape
    tm, Mp = _tile_rows(M)
    out = pl.pallas_call(
        _emb_ln_mask_kernel,
        out_shape=jax.ShapeDtypeStruct((Mp, D), jnp.bfloat16),
        grid=(Mp // tm,),
        in_specs=[
            pl.BlockSpec((tm, D), lambda i: (i, 0)),
            pl.BlockSpec((tm, 1), lambda i: (i, 0)),
            pl.BlockSpec((1, D), lambda i: (0, 0)),
            pl.BlockSpec((1, D), lambda i: (0, 0)),
        ],
        out_specs=pl.BlockSpec((tm, D), lambda i: (i, 0)),
        compiler_params=_compiler_params(),
    )(_pad_rows(x, Mp), _pad_rows(mask, Mp), g.reshape(1, D), b.reshape(1, D))
    return out[:M]


def in_proj_gate(h, wx1, wx2, wv, bx1, bx2, bv):
    """Returns (x1*v) [f32] and x2 [bf16].  h: [M, D] bf16."""
    M, D = h.shape
    tm, Mp = _tile_rows(M)
    xv, x2 = pl.pallas_call(
        _in_proj_gate_kernel,
        out_shape=(jax.ShapeDtypeStruct((Mp, D), jnp.float32),
                   jax.ShapeDtypeStruct((Mp, D), jnp.bfloat16)),
        grid=(Mp // tm,),
        in_specs=[
            pl.BlockSpec((tm, D), lambda i: (i, 0)),
            pl.BlockSpec((D, D), lambda i: (0, 0)),
            pl.BlockSpec((D, D), lambda i: (0, 0)),
            pl.BlockSpec((D, D), lambda i: (0, 0)),
            pl.BlockSpec((1, D), lambda i: (0, 0)),
            pl.BlockSpec((1, D), lambda i: (0, 0)),
            pl.BlockSpec((1, D), lambda i: (0, 0)),
        ],
        out_specs=(pl.BlockSpec((tm, D), lambda i: (i, 0)),
                   pl.BlockSpec((tm, D), lambda i: (i, 0))),
        compiler_params=_compiler_params(),
    )(_pad_rows(h, Mp), wx1, wx2, wv,
      bx1.reshape(1, D), bx2.reshape(1, D), bv.reshape(1, D))
    return xv[:M], x2[:M]


def gate_out_residual_ln(x2, conv, h, w, b, g, beta):
    """LN(h + (x2*conv) @ w + b) -> bf16 [M, D]."""
    M, D = h.shape
    tm, Mp = _tile_rows(M)
    out = pl.pallas_call(
        _gate_out_residual_ln_kernel,
        out_shape=jax.ShapeDtypeStruct((Mp, D), jnp.bfloat16),
        grid=(Mp // tm,),
        in_specs=[
            pl.BlockSpec((tm, D), lambda i: (i, 0)),
            pl.BlockSpec((tm, D), lambda i: (i, 0)),
            pl.BlockSpec((tm, D), lambda i: (i, 0)),
            pl.BlockSpec((D, D), lambda i: (0, 0)),
            pl.BlockSpec((1, D), lambda i: (0, 0)),
            pl.BlockSpec((1, D), lambda i: (0, 0)),
            pl.BlockSpec((1, D), lambda i: (0, 0)),
        ],
        out_specs=pl.BlockSpec((tm, D), lambda i: (i, 0)),
        compiler_params=_compiler_params(),
    )(_pad_rows(x2, Mp), _pad_rows(conv, Mp), _pad_rows(h, Mp),
      w, b.reshape(1, D), g.reshape(1, D), beta.reshape(1, D))
    return out[:M]


def mlp_residual_ln(h, w1, b1, w2, b2, g, beta):
    """LN(h + gelu(h @ w1 + b1) @ w2 + b2) -> bf16 [M, D]."""
    M, D = h.shape
    I = w1.shape[1]
    tm, Mp = _tile_rows(M)
    out = pl.pallas_call(
        _mlp_residual_ln_kernel,
        out_shape=jax.ShapeDtypeStruct((Mp, D), jnp.bfloat16),
        grid=(Mp // tm,),
        in_specs=[
            pl.BlockSpec((tm, D), lambda i: (i, 0)),
            pl.BlockSpec((D, I), lambda i: (0, 0)),
            pl.BlockSpec((1, I), lambda i: (0, 0)),
            pl.BlockSpec((I, D), lambda i: (0, 0)),
            pl.BlockSpec((1, D), lambda i: (0, 0)),
            pl.BlockSpec((1, D), lambda i: (0, 0)),
            pl.BlockSpec((1, D), lambda i: (0, 0)),
        ],
        out_specs=pl.BlockSpec((tm, D), lambda i: (i, 0)),
        compiler_params=_compiler_params(),
    )(_pad_rows(h, Mp), w1, b1.reshape(1, I), w2, b2.reshape(1, D),
      g.reshape(1, D), beta.reshape(1, D))
    return out[:M]


# ---------------------------------------------------------------------------
# Parameter construction (synthetic, deterministic)
# ---------------------------------------------------------------------------
def init_params(key, *, vocab, max_pos, hidden, intermediate, num_layers):
    def dense(k, shape, scale=0.02, dtype=jnp.float32):
        return (scale * jax.random.normal(k, shape, dtype=jnp.float32)).astype(dtype)

    keys = jax.random.split(key, 4 + num_layers)
    params = {
        "word_emb": dense(keys[0], (vocab, hidden)),
        "pos_emb": dense(keys[1], (max_pos, hidden)),
        "tok_type_emb": dense(keys[2], (2, hidden)),
        "emb_ln_g": jnp.ones((hidden,), jnp.float32),
        "emb_ln_b": jnp.zeros((hidden,), jnp.float32),
        "layers": [],
    }
    for l in range(num_layers):
        ks = jax.random.split(keys[3 + l], 8)
        params["layers"].append({
            # gated long-conv (Monarch-Mixer / Hyena style) sequence mixer;
            # in-projection stored as three [D, D] matrices so the kernel
            # never slices the lane dimension.
            "w_x1": dense(ks[0], (hidden, hidden), dtype=jnp.bfloat16),
            "w_x2": dense(ks[1], (hidden, hidden), dtype=jnp.bfloat16),
            "w_v": dense(ks[2], (hidden, hidden), dtype=jnp.bfloat16),
            "b_x1": jnp.zeros((hidden,), jnp.float32),
            "b_x2": jnp.zeros((hidden,), jnp.float32),
            "b_v": jnp.zeros((hidden,), jnp.float32),
            "filter": dense(ks[3], (max_pos, hidden), scale=0.1),
            "out_w": dense(ks[4], (hidden, hidden), dtype=jnp.bfloat16),
            "out_b": jnp.zeros((hidden,), jnp.float32),
            "mix_ln_g": jnp.ones((hidden,), jnp.float32),
            "mix_ln_b": jnp.zeros((hidden,), jnp.float32),
            # MLP
            "w1": dense(ks[5], (hidden, intermediate), dtype=jnp.bfloat16),
            "b1": jnp.zeros((intermediate,), jnp.float32),
            "w2": dense(ks[6], (intermediate, hidden), dtype=jnp.bfloat16),
            "b2": jnp.zeros((hidden,), jnp.float32),
            "mlp_ln_g": jnp.ones((hidden,), jnp.float32),
            "mlp_ln_b": jnp.zeros((hidden,), jnp.float32),
        })
    kc = jax.random.split(keys[-1], 2)[1]
    params["cls_w"] = dense(kc, (hidden, 1))
    params["cls_b"] = jnp.zeros((1,), jnp.float32)
    return params


# ---------------------------------------------------------------------------
# Forward pass (mirrors M2BertReranker.forward)
# ---------------------------------------------------------------------------
def m2bert_reranker_forward(params, input_ids, attention_mask, token_type_ids=None):
    B, S = input_ids.shape
    D = params["word_emb"].shape[1]
    if token_type_ids is None:
        token_type_ids = jnp.zeros_like(input_ids)

    # --- embeddings (gather = glue, left to XLA) ---
    emb = (params["word_emb"][input_ids]
           + params["pos_emb"][:S][None, :, :]
           + params["tok_type_emb"][token_type_ids]).astype(jnp.float32)
    emb = emb.reshape(B * S, D)
    mask = attention_mask.astype(jnp.float32).reshape(B * S, 1)

    # LayerNorm + attention-mask multiply fused in one kernel; h is bf16.
    h = emb_layernorm_mask(emb, mask, params["emb_ln_g"], params["emb_ln_b"])

    for lyr in params["layers"]:
        # --- Monarch-Mixer style gated long-conv sequence mixer ---
        xv, x2 = in_proj_gate(h, lyr["w_x1"], lyr["w_x2"], lyr["w_v"],
                              lyr["b_x1"], lyr["b_x2"], lyr["b_v"])
        # TODO(synk): FFT long convolution (flashfft) has no Pallas equivalent;
        # done with jnp.fft along the sequence axis (f32).
        u = xv.reshape(B, S, D)
        k = lyr["filter"][:S].astype(jnp.float32)
        conv = jnp.fft.irfft(jnp.fft.rfft(u, n=S, axis=1)
                             * jnp.fft.rfft(k, n=S, axis=0)[None, :, :],
                             n=S, axis=1)
        conv = conv.reshape(B * S, D).astype(jnp.bfloat16)
        # output gate + out-projection + residual + LayerNorm, all fused
        h = gate_out_residual_ln(x2, conv, h, lyr["out_w"], lyr["out_b"],
                                 lyr["mix_ln_g"], lyr["mix_ln_b"])
        # --- MLP block: w1 + GELU + w2 + residual + LayerNorm, all fused ---
        h = mlp_residual_ln(h, lyr["w1"], lyr["b1"], lyr["w2"], lyr["b2"],
                            lyr["mlp_ln_g"], lyr["mlp_ln_b"])

    last_hidden_states = h.reshape(B, S, D).astype(jnp.float32)
    cls_output = last_hidden_states[:, 0, :]                     # [B, D]
    # Classifier head has N=1: plain jnp.dot avoids a masked-store pallas call.
    logits = cls_output @ params["cls_w"] + params["cls_b"]      # [B, 1]
    return logits


# ---------------------------------------------------------------------------
if __name__ == "__main__":
    # small, module-consistent shapes
    BATCH, SEQ = 2, 8
    VOCAB, MAX_POS, HIDDEN, INTERMEDIATE, LAYERS = 64, 16, 64, 128, 2

    root = jax.random.PRNGKey(0)
    k_par, k_ids = jax.random.split(root)

    params = init_params(k_par, vocab=VOCAB, max_pos=MAX_POS, hidden=HIDDEN,
                         intermediate=INTERMEDIATE, num_layers=LAYERS)

    input_ids = jax.random.randint(k_ids, (BATCH, SEQ), 0, VOCAB, dtype=jnp.int32)
    attention_mask = jnp.ones((BATCH, SEQ), dtype=jnp.int32)
    attention_mask = attention_mask.at[1, SEQ - 2:].set(0)       # some padding
    token_type_ids = jnp.zeros((BATCH, SEQ), dtype=jnp.int32)

    fwd = jax.jit(m2bert_reranker_forward)
    logits = fwd(params, input_ids, attention_mask, token_type_ids)
    logits = jax.block_until_ready(logits)

    assert logits.shape == (BATCH, 1), logits.shape
    assert logits.dtype == jnp.float32
    assert bool(jnp.all(jnp.isfinite(logits)))
    print("KERNEL_OK")
</pallas_src>

<mosaic_0001>
module attributes {stable_mosaic.version = 11 : i64} {
  func.func @_in_proj_gate_kernel(%arg0: i32, %arg1: memref<16x64xbf16, #tpu.memory_space<vmem>>, %arg2: memref<64x64xbf16, #tpu.memory_space<vmem>>, %arg3: memref<64x64xbf16, #tpu.memory_space<vmem>>, %arg4: memref<64x64xbf16, #tpu.memory_space<vmem>>, %arg5: memref<1x64xf32, #tpu.memory_space<vmem>>, %arg6: memref<1x64xf32, #tpu.memory_space<vmem>>, %arg7: memref<1x64xf32, #tpu.memory_space<vmem>>, %arg8: memref<16x64xf32, #tpu.memory_space<vmem>>, %arg9: memref<16x64xbf16, #tpu.memory_space<vmem>>) attributes {dimension_semantics = [#tpu.dimension_semantics<parallel>], iteration_bounds = array<i64: 1>, scalar_prefetch = 0 : i64, scratch_operands = 0 : i64, tpu.core_type = #tpu.core_type<tc>, window_params = [{transform_indices = @transform_0, window_bounds = array<i64: 16, 64>}, {pipeline_mode = #tpu.pipeline_mode<synchronous>, transform_indices = @transform_1, window_bounds = array<i64: 64, 64>}, {pipeline_mode = #tpu.pipeline_mode<synchronous>, transform_indices = @transform_2, window_bounds = array<i64: 64, 64>}, {pipeline_mode = #tpu.pipeline_mode<synchronous>, transform_indices = @transform_3, window_bounds = array<i64: 64, 64>}, {pipeline_mode = #tpu.pipeline_mode<synchronous>, transform_indices = @transform_4, window_bounds = array<i64: 1, 64>}, {pipeline_mode = #tpu.pipeline_mode<synchronous>, transform_indices = @transform_5, window_bounds = array<i64: 1, 64>}, {pipeline_mode = #tpu.pipeline_mode<synchronous>, transform_indices = @transform_6, window_bounds = array<i64: 1, 64>}, {transform_indices = @transform_7, window_bounds = array<i64: 16, 64>}, {transform_indices = @transform_8, window_bounds = array<i64: 16, 64>}]} {
    %c0 = arith.constant 0 : index
    %c0_0 = arith.constant 0 : index
    %0 = vector.load %arg1[%c0, %c0_0] : memref<16x64xbf16, #tpu.memory_space<vmem>>, vector<16x64xbf16>
    %c0_1 = arith.constant 0 : index
    %c0_2 = arith.constant 0 : index
    %1 = vector.load %arg2[%c0_1, %c0_2] : memref<64x64xbf16, #tpu.memory_space<vmem>>, vector<64x64xbf16>
    %cst = arith.constant dense<0.000000e+00> : vector<16x64xf32>
    %2 = tpu.matmul %0, %1, %cst {dimension_numbers = #tpu.dot_dimension_numbers<[1], [0], [0], [1], [0, 0, 1, 1], [], []>} : vector<16x64xbf16>, vector<64x64xbf16>, vector<16x64xf32> -> vector<16x64xf32>
    %c0_3 = arith.constant 0 : index
    %c0_4 = arith.constant 0 : index
    %3 = vector.load %arg5[%c0_3, %c0_4] : memref<1x64xf32, #tpu.memory_space<vmem>>, vector<1x64xf32>
    %4 = vector.broadcast %3 : vector<1x64xf32> to vector<16x64xf32>
    %5 = arith.addf %2, %4 : vector<16x64xf32>
    %c0_5 = arith.constant 0 : index
    %c0_6 = arith.constant 0 : index
    %6 = vector.load %arg3[%c0_5, %c0_6] : memref<64x64xbf16, #tpu.memory_space<vmem>>, vector<64x64xbf16>
    %cst_7 = arith.constant dense<0.000000e+00> : vector<16x64xf32>
    %7 = tpu.matmul %0, %6, %cst_7 {dimension_numbers = #tpu.dot_dimension_numbers<[1], [0], [0], [1], [0, 0, 1, 1], [], []>} : vector<16x64xbf16>, vector<64x64xbf16>, vector<16x64xf32> -> vector<16x64xf32>
    %c0_8 = arith.constant 0 : index
    %c0_9 = arith.constant 0 : index
    %8 = vector.load %arg6[%c0_8, %c0_9] : memref<1x64xf32, #tpu.memory_space<vmem>>, vector<1x64xf32>
    %9 = vector.broadcast %8 : vector<1x64xf32> to vector<16x64xf32>
    %10 = arith.addf %7, %9 : vector<16x64xf32>
    %c0_10 = arith.constant 0 : index
    %c0_11 = arith.constant 0 : index
    %11 = vector.load %arg4[%c0_10, %c0_11] : memref<64x64xbf16, #tpu.memory_space<vmem>>, vector<64x64xbf16>
    %cst_12 = arith.constant dense<0.000000e+00> : vector<16x64xf32>
    %12 = tpu.matmul %0, %11, %cst_12 {dimension_numbers = #tpu.dot_dimension_numbers<[1], [0], [0], [1], [0, 0, 1, 1], [], []>} : vector<16x64xbf16>, vector<64x64xbf16>, vector<16x64xf32> -> vector<16x64xf32>
    %c0_13 = arith.constant 0 : index
    %c0_14 = arith.constant 0 : index
    %13 = vector.load %arg7[%c0_13, %c0_14] : memref<1x64xf32, #tpu.memory_space<vmem>>, vector<1x64xf32>
    %14 = vector.broadcast %13 : vector<1x64xf32> to vector<16x64xf32>
    %15 = arith.addf %12, %14 : vector<16x64xf32>
    %16 = arith.mulf %5, %15 : vector<16x64xf32>
    %c0_15 = arith.constant 0 : index
    %c0_16 = arith.constant 0 : index
    %17 = vector.load %arg8[%c0_15, %c0_16] : memref<16x64xf32, #tpu.memory_space<vmem>>, vector<16x64xf32>
    tpu.vector_store %arg8[%c0_15, %c0_16], %16 {strides = array<i32>} : memref<16x64xf32, #tpu.memory_space<vmem>>, vector<16x64xf32>,
    %18 = arith.truncf %10 : vector<16x64xf32> to vector<16x64xbf16>
    %c0_17 = arith.constant 0 : index
    %c0_18 = arith.constant 0 : index
    %19 = vector.load %arg9[%c0_17, %c0_18] : memref<16x64xbf16, #tpu.memory_space<vmem>>, vector<16x64xbf16>
    tpu.vector_store %arg9[%c0_17, %c0_18], %18 {strides = array<i32>} : memref<16x64xbf16, #tpu.memory_space<vmem>>, vector<16x64xbf16>,
    return
  }
  func.func @transform_0(%arg0: i32) -> (i32, i32) {
    %c0_i32 = arith.constant 0 : i32
    %c0_i32_0 = arith.constant 0 : i32
    return %arg0, %c0_i32 : i32, i32
  }
  func.func @transform_1(%arg0: i32) -> (i32, i32) {
    %c0_i32 = arith.constant 0 : i32
    %c0_i32_0 = arith.constant 0 : i32
    %c0_i32_1 = arith.constant 0 : i32
    return %c0_i32, %c0_i32_0 : i32, i32
  }
  func.func @transform_2(%arg0: i32) -> (i32, i32) {
    %c0_i32 = arith.constant 0 : i32
    %c0_i32_0 = arith.constant 0 : i32
    %c0_i32_1 = arith.constant 0 : i32
    return %c0_i32, %c0_i32_0 : i32, i32
  }
  func.func @transform_3(%arg0: i32) -> (i32, i32) {
    %c0_i32 = arith.constant 0 : i32
    %c0_i32_0 = arith.constant 0 : i32
    %c0_i32_1 = arith.constant 0 : i32
    return %c0_i32, %c0_i32_0 : i32, i32
  }
  func.func @transform_4(%arg0: i32) -> (i32, i32) {
    %c0_i32 = arith.constant 0 : i32
    %c0_i32_0 = arith.constant 0 : i32
    %c0_i32_1 = arith.constant 0 : i32
    return %c0_i32, %c0_i32_0 : i32, i32
  }
  func.func @transform_5(%arg0: i32) -> (i32, i32) {
    %c0_i32 = arith.constant 0 : i32
    %c0_i32_0 = arith.constant 0 : i32
    %c0_i32_1 = arith.constant 0 : i32
    return %c0_i32, %c0_i32_0 : i32, i32
  }
  func.func @transform_6(%arg0: i32) -> (i32, i32) {
    %c0_i32 = arith.constant 0 : i32
    %c0_i32_0 = arith.constant 0 : i32
    %c0_i32_1 = arith.constant 0 : i32
    return %c0_i32, %c0_i32_0 : i32, i32
  }
  func.func @transform_7(%arg0: i32) -> (i32, i32) {
    %c0_i32 = arith.constant 0 : i32
    %c0_i32_0 = arith.constant 0 : i32
    return %arg0, %c0_i32 : i32, i32
  }
  func.func @transform_8(%arg0: i32) -> (i32, i32) {
    %c0_i32 = arith.constant 0 : i32
    %c0_i32_0 = arith.constant 0 : i32
    return %arg0, %c0_i32 : i32, i32
  }
}

module attributes {stable_mosaic.version = 11 : i64} {
  func.func @_emb_ln_mask_kernel(%arg0: i32, %arg1: memref<16x64xf32, #tpu.memory_space<vmem>>, %arg2: memref<16x1xf32, #tpu.memory_space<vmem>>, %arg3: memref<1x64xf32, #tpu.memory_space<vmem>>, %arg4: memref<1x64xf32, #tpu.memory_space<vmem>>, %arg5: memref<16x64xbf16, #tpu.memory_space<vmem>>) attributes {dimension_semantics = [#tpu.dimension_semantics<parallel>], iteration_bounds = array<i64: 1>, scalar_prefetch = 0 : i64, scratch_operands = 0 : i64, tpu.core_type = #tpu.core_type<tc>, window_params = [{transform_indices = @transform_0, window_bounds = array<i64: 16, 64>}, {transform_indices = @transform_1, window_bounds = array<i64: 16, 1>}, {pipeline_mode = #tpu.pipeline_mode<synchronous>, transform_indices = @transform_2, window_bounds = array<i64: 1, 64>}, {pipeline_mode = #tpu.pipeline_mode<synchronous>, transform_indices = @transform_3, window_bounds = array<i64: 1, 64>}, {transform_indices = @transform_4, window_bounds = array<i64: 16, 64>}]} {
    %c0 = arith.constant 0 : index
    %c0_0 = arith.constant 0 : index
    %0 = vector.load %arg1[%c0, %c0_0] : memref<16x64xf32, #tpu.memory_space<vmem>>, vector<16x64xf32>
    %c0_1 = arith.constant 0 : index
    %c0_2 = arith.constant 0 : index
    %1 = vector.load %arg3[%c0_1, %c0_2] : memref<1x64xf32, #tpu.memory_space<vmem>>, vector<1x64xf32>
    %c0_3 = arith.constant 0 : index
    %c0_4 = arith.constant 0 : index
    %2 = vector.load %arg4[%c0_3, %c0_4] : memref<1x64xf32, #tpu.memory_space<vmem>>, vector<1x64xf32>
    %cst = arith.constant dense<0.000000e+00> : vector<16xf32>
    %3 = vector.multi_reduction <add>, %0, %cst [1] : vector<16x64xf32> to vector<16xf32>
    %4 = vector.shape_cast %3 : vector<16xf32> to vector<16x1xf32>
    %cst_5 = arith.constant 6.400000e+01 : f32
    %5 = vector.broadcast %cst_5 : f32 to vector<16x1xf32>
    %6 = arith.divf %4, %5 : vector<16x1xf32>
    %7 = vector.broadcast %6 : vector<16x1xf32> to vector<16x64xf32>
    %8 = arith.subf %0, %7 : vector<16x64xf32>
    %9 = arith.mulf %8, %8 : vector<16x64xf32>
    %cst_6 = arith.constant dense<0.000000e+00> : vector<16xf32>
    %10 = vector.multi_reduction <add>, %9, %cst_6 [1] : vector<16x64xf32> to vector<16xf32>
    %11 = vector.shape_cast %10 : vector<16xf32> to vector<16x1xf32>
    %cst_7 = arith.constant 6.400000e+01 : f32
    %12 = vector.broadcast %cst_7 : f32 to vector<16x1xf32>
    %13 = arith.divf %11, %12 : vector<16x1xf32>
    %14 = vector.broadcast %6 : vector<16x1xf32> to vector<16x64xf32>
    %15 = arith.subf %0, %14 : vector<16x64xf32>
    %cst_8 = arith.constant 9.99999996E-13 : f32
    %16 = vector.broadcast %cst_8 : f32 to vector<16x1xf32>
    %17 = arith.addf %13, %16 : vector<16x1xf32>
    %18 = math.rsqrt %17 : vector<16x1xf32>
    %19 = vector.broadcast %18 : vector<16x1xf32> to vector<16x64xf32>
    %20 = arith.mulf %15, %19 : vector<16x64xf32>
    %21 = vector.broadcast %1 : vector<1x64xf32> to vector<16x64xf32>
    %22 = arith.mulf %20, %21 : vector<16x64xf32>
    %23 = vector.broadcast %2 : vector<1x64xf32> to vector<16x64xf32>
    %24 = arith.addf %22, %23 : vector<16x64xf32>
    %c0_9 = arith.constant 0 : index
    %c0_10 = arith.constant 0 : index
    %25 = vector.load %arg2[%c0_9, %c0_10] : memref<16x1xf32, #tpu.memory_space<vmem>>, vector<16x1xf32>
    %26 = vector.broadcast %25 : vector<16x1xf32> to vector<16x64xf32>
    %27 = arith.mulf %24, %26 : vector<16x64xf32>
    %28 = arith.truncf %27 : vector<16x64xf32> to vector<16x64xbf16>
    %c0_11 = arith.constant 0 : index
    %c0_12 = arith.constant 0 : index
    %29 = vector.load %arg5[%c0_11, %c0_12] : memref<16x64xbf16, #tpu.memory_space<vmem>>, vector<16x64xbf16>
    tpu.vector_store %arg5[%c0_11, %c0_12], %28 {strides = array<i32>} : memref<16x64xbf16, #tpu.memory_space<vmem>>, vector<16x64xbf16>,
    return
  }
  func.func @transform_0(%arg0: i32) -> (i32, i32) {
    %c0_i32 = arith.constant 0 : i32
    %c0_i32_0 = arith.constant 0 : i32
    return %arg0, %c0_i32 : i32, i32
  }
  func.func @transform_1(%arg0: i32) -> (i32, i32) {
    %c0_i32 = arith.constant 0 : i32
    %c0_i32_0 = arith.constant 0 : i32
    return %arg0, %c0_i32 : i32, i32
  }
  func.func @transform_2(%arg0: i32) -> (i32, i32) {
    %c0_i32 = arith.constant 0 : i32
    %c0_i32_0 = arith.constant 0 : i32
    %c0_i32_1 = arith.constant 0 : i32
    return %c0_i32, %c0_i32_0 : i32, i32
  }
  func.func @transform_3(%arg0: i32) -> (i32, i32) {
    %c0_i32 = arith.constant 0 : i32
    %c0_i32_0 = arith.constant 0 : i32
    %c0_i32_1 = arith.constant 0 : i32
    return %c0_i32, %c0_i32_0 : i32, i32
  }
  func.func @transform_4(%arg0: i32) -> (i32, i32) {
    %c0_i32 = arith.constant 0 : i32
    %c0_i32_0 = arith.constant 0 : i32
    return %arg0, %c0_i32 : i32, i32
  }
}

module attributes {stable_mosaic.version = 11 : i64} {
  func.func @_gate_out_residual_ln_kernel(%arg0: i32, %arg1: memref<16x64xbf16, #tpu.memory_space<vmem>>, %arg2: memref<16x64xbf16, #tpu.memory_space<vmem>>, %arg3: memref<16x64xbf16, #tpu.memory_space<vmem>>, %arg4: memref<64x64xbf16, #tpu.memory_space<vmem>>, %arg5: memref<1x64xf32, #tpu.memory_space<vmem>>, %arg6: memref<1x64xf32, #tpu.memory_space<vmem>>, %arg7: memref<1x64xf32, #tpu.memory_space<vmem>>, %arg8: memref<16x64xbf16, #tpu.memory_space<vmem>>) attributes {dimension_semantics = [#tpu.dimension_semantics<parallel>], iteration_bounds = array<i64: 1>, scalar_prefetch = 0 : i64, scratch_operands = 0 : i64, tpu.core_type = #tpu.core_type<tc>, window_params = [{transform_indices = @transform_0, window_bounds = array<i64: 16, 64>}, {transform_indices = @transform_1, window_bounds = array<i64: 16, 64>}, {transform_indices = @transform_2, window_bounds = array<i64: 16, 64>}, {pipeline_mode = #tpu.pipeline_mode<synchronous>, transform_indices = @transform_3, window_bounds = array<i64: 64, 64>}, {pipeline_mode = #tpu.pipeline_mode<synchronous>, transform_indices = @transform_4, window_bounds = array<i64: 1, 64>}, {pipeline_mode = #tpu.pipeline_mode<synchronous>, transform_indices = @transform_5, window_bounds = array<i64: 1, 64>}, {pipeline_mode = #tpu.pipeline_mode<synchronous>, transform_indices = @transform_6, window_bounds = array<i64: 1, 64>}, {transform_indices = @transform_7, window_bounds = array<i64: 16, 64>}]} {
    %c0 = arith.constant 0 : index
    %c0_0 = arith.constant 0 : index
    %0 = vector.load %arg1[%c0, %c0_0] : memref<16x64xbf16, #tpu.memory_space<vmem>>, vector<16x64xbf16>
    %1 = arith.extf %0 : vector<16x64xbf16> to vector<16x64xf32>
    %c0_1 = arith.constant 0 : index
    %c0_2 = arith.constant 0 : index
    %2 = vector.load %arg2[%c0_1, %c0_2] : memref<16x64xbf16, #tpu.memory_space<vmem>>, vector<16x64xbf16>
    %3 = arith.extf %2 : vector<16x64xbf16> to vector<16x64xf32>
    %4 = arith.mulf %1, %3 : vector<16x64xf32>
    %5 = arith.truncf %4 : vector<16x64xf32> to vector<16x64xbf16>
    %c0_3 = arith.constant 0 : index
    %c0_4 = arith.constant 0 : index
    %6 = vector.load %arg4[%c0_3, %c0_4] : memref<64x64xbf16, #tpu.memory_space<vmem>>, vector<64x64xbf16>
    %cst = arith.constant dense<0.000000e+00> : vector<16x64xf32>
    %7 = tpu.matmul %5, %6, %cst {dimension_numbers = #tpu.dot_dimension_numbers<[1], [0], [0], [1], [0, 0, 1, 1], [], []>} : vector<16x64xbf16>, vector<64x64xbf16>, vector<16x64xf32> -> vector<16x64xf32>
    %c0_5 = arith.constant 0 : index
    %c0_6 = arith.constant 0 : index
    %8 = vector.load %arg5[%c0_5, %c0_6] : memref<1x64xf32, #tpu.memory_space<vmem>>, vector<1x64xf32>
    %9 = vector.broadcast %8 : vector<1x64xf32> to vector<16x64xf32>
    %10 = arith.addf %7, %9 : vector<16x64xf32>
    %c0_7 = arith.constant 0 : index
    %c0_8 = arith.constant 0 : index
    %11 = vector.load %arg3[%c0_7, %c0_8] : memref<16x64xbf16, #tpu.memory_space<vmem>>, vector<16x64xbf16>
    %12 = arith.extf %11 : vector<16x64xbf16> to vector<16x64xf32>
    %13 = arith.addf %12, %10 : vector<16x64xf32>
    %c0_9 = arith.constant 0 : index
    %c0_10 = arith.constant 0 : index
    %14 = vector.load %arg6[%c0_9, %c0_10] : memref<1x64xf32, #tpu.memory_space<vmem>>, vector<1x64xf32>
    %c0_11 = arith.constant 0 : index
    %c0_12 = arith.constant 0 : index
    %15 = vector.load %arg7[%c0_11, %c0_12] : memref<1x64xf32, #tpu.memory_space<vmem>>, vector<1x64xf32>
    %cst_13 = arith.constant dense<0.000000e+00> : vector<16xf32>
    %16 = vector.multi_reduction <add>, %13, %cst_13 [1] : vector<16x64xf32> to vector<16xf32>
    %17 = vector.shape_cast %16 : vector<16xf32> to vector<16x1xf32>
    %cst_14 = arith.constant 6.400000e+01 : f32
    %18 = vector.broadcast %cst_14 : f32 to vector<16x1xf32>
    %19 = arith.divf %17, %18 : vector<16x1xf32>
    %20 = vector.broadcast %19 : vector<16x1xf32> to vector<16x64xf32>
    %21 = arith.subf %13, %20 : vector<16x64xf32>
    %22 = arith.mulf %21, %21 : vector<16x64xf32>
    %cst_15 = arith.constant dense<0.000000e+00> : vector<16xf32>
    %23 = vector.multi_reduction <add>, %22, %cst_15 [1] : vector<16x64xf32> to vector<16xf32>
    %24 = vector.shape_cast %23 : vector<16xf32> to vector<16x1xf32>
    %cst_16 = arith.constant 6.400000e+01 : f32
    %25 = vector.broadcast %cst_16 : f32 to vector<16x1xf32>
    %26 = arith.divf %24, %25 : vector<16x1xf32>
    %27 = vector.broadcast %19 : vector<16x1xf32> to vector<16x64xf32>
    %28 = arith.subf %13, %27 : vector<16x64xf32>
    %cst_17 = arith.constant 9.99999996E-13 : f32
    %29 = vector.broadcast %cst_17 : f32 to vector<16x1xf32>
    %30 = arith.addf %26, %29 : vector<16x1xf32>
    %31 = math.rsqrt %30 : vector<16x1xf32>
    %32 = vector.broadcast %31 : vector<16x1xf32> to vector<16x64xf32>
    %33 = arith.mulf %28, %32 : vector<16x64xf32>
    %34 = vector.broadcast %14 : vector<1x64xf32> to vector<16x64xf32>
    %35 = arith.mulf %33, %34 : vector<16x64xf32>
    %36 = vector.broadcast %15 : vector<1x64xf32> to vector<16x64xf32>
    %37 = arith.addf %35, %36 : vector<16x64xf32>
    %38 = arith.truncf %37 : vector<16x64xf32> to vector<16x64xbf16>
    %c0_18 = arith.constant 0 : index
    %c0_19 = arith.constant 0 : index
    %39 = vector.load %arg8[%c0_18, %c0_19] : memref<16x64xbf16, #tpu.memory_space<vmem>>, vector<16x64xbf16>
    tpu.vector_store %arg8[%c0_18, %c0_19], %38 {strides = array<i32>} : memref<16x64xbf16, #tpu.memory_space<vmem>>, vector<16x64xbf16>,
    return
  }
  func.func @transform_0(%arg0: i32) -> (i32, i32) {
    %c0_i32 = arith.constant 0 : i32
    %c0_i32_0 = arith.constant 0 : i32
    return %arg0, %c0_i32 : i32, i32
  }
  func.func @transform_1(%arg0: i32) -> (i32, i32) {
    %c0_i32 = arith.constant 0 : i32
    %c0_i32_0 = arith.constant 0 : i32
    return %arg0, %c0_i32 : i32, i32
  }
  func.func @transform_2(%arg0: i32) -> (i32, i32) {
    %c0_i32 = arith.constant 0 : i32
    %c0_i32_0 = arith.constant 0 : i32
    return %arg0, %c0_i32 : i32, i32
  }
  func.func @transform_3(%arg0: i32) -> (i32, i32) {
    %c0_i32 = arith.constant 0 : i32
    %c0_i32_0 = arith.constant 0 : i32
    %c0_i32_1 = arith.constant 0 : i32
    return %c0_i32, %c0_i32_0 : i32, i32
  }
  func.func @transform_4(%arg0: i32) -> (i32, i32) {
    %c0_i32 = arith.constant 0 : i32
    %c0_i32_0 = arith.constant 0 : i32
    %c0_i32_1 = arith.constant 0 : i32
    return %c0_i32, %c0_i32_0 : i32, i32
  }
  func.func @transform_5(%arg0: i32) -> (i32, i32) {
    %c0_i32 = arith.constant 0 : i32
    %c0_i32_0 = arith.constant 0 : i32
    %c0_i32_1 = arith.constant 0 : i32
    return %c0_i32, %c0_i32_0 : i32, i32
  }
  func.func @transform_6(%arg0: i32) -> (i32, i32) {
    %c0_i32 = arith.constant 0 : i32
    %c0_i32_0 = arith.constant 0 : i32
    %c0_i32_1 = arith.constant 0 : i32
    return %c0_i32, %c0_i32_0 : i32, i32
  }
  func.func @transform_7(%arg0: i32) -> (i32, i32) {
    %c0_i32 = arith.constant 0 : i32
    %c0_i32_0 = arith.constant 0 : i32
    return %arg0, %c0_i32 : i32, i32
  }
}

module attributes {stable_mosaic.version = 11 : i64} {
  func.func @_mlp_residual_ln_kernel(%arg0: i32, %arg1: memref<16x64xbf16, #tpu.memory_space<vmem>>, %arg2: memref<64x128xbf16, #tpu.memory_space<vmem>>, %arg3: memref<1x128xf32, #tpu.memory_space<vmem>>, %arg4: memref<128x64xbf16, #tpu.memory_space<vmem>>, %arg5: memref<1x64xf32, #tpu.memory_space<vmem>>, %arg6: memref<1x64xf32, #tpu.memory_space<vmem>>, %arg7: memref<1x64xf32, #tpu.memory_space<vmem>>, %arg8: memref<16x64xbf16, #tpu.memory_space<vmem>>) attributes {dimension_semantics = [#tpu.dimension_semantics<parallel>], iteration_bounds = array<i64: 1>, scalar_prefetch = 0 : i64, scratch_operands = 0 : i64, tpu.core_type = #tpu.core_type<tc>, window_params = [{transform_indices = @transform_0, window_bounds = array<i64: 16, 64>}, {pipeline_mode = #tpu.pipeline_mode<synchronous>, transform_indices = @transform_1, window_bounds = array<i64: 64, 128>}, {pipeline_mode = #tpu.pipeline_mode<synchronous>, transform_indices = @transform_2, window_bounds = array<i64: 1, 128>}, {pipeline_mode = #tpu.pipeline_mode<synchronous>, transform_indices = @transform_3, window_bounds = array<i64: 128, 64>}, {pipeline_mode = #tpu.pipeline_mode<synchronous>, transform_indices = @transform_4, window_bounds = array<i64: 1, 64>}, {pipeline_mode = #tpu.pipeline_mode<synchronous>, transform_indices = @transform_5, window_bounds = array<i64: 1, 64>}, {pipeline_mode = #tpu.pipeline_mode<synchronous>, transform_indices = @transform_6, window_bounds = array<i64: 1, 64>}, {transform_indices = @transform_7, window_bounds = array<i64: 16, 64>}]} {
    %c0 = arith.constant 0 : index
    %c0_0 = arith.constant 0 : index
    %0 = vector.load %arg1[%c0, %c0_0] : memref<16x64xbf16, #tpu.memory_space<vmem>>, vector<16x64xbf16>
    %c0_1 = arith.constant 0 : index
    %c0_2 = arith.constant 0 : index
    %1 = vector.load %arg2[%c0_1, %c0_2] : memref<64x128xbf16, #tpu.memory_space<vmem>>, vector<64x128xbf16>
    %cst = arith.constant dense<0.000000e+00> : vector<16x128xf32>
    %2 = tpu.matmul %0, %1, %cst {dimension_numbers = #tpu.dot_dimension_numbers<[1], [0], [0], [1], [0, 0, 1, 1], [], []>} : vector<16x64xbf16>, vector<64x128xbf16>, vector<16x128xf32> -> vector<16x128xf32>
    %c0_3 = arith.constant 0 : index
    %c0_4 = arith.constant 0 : index
    %3 = vector.load %arg3[%c0_3, %c0_4] : memref<1x128xf32, #tpu.memory_space<vmem>>, vector<1x128xf32>
    %4 = vector.broadcast %3 : vector<1x128xf32> to vector<16x128xf32>
    %5 = arith.addf %2, %4 : vector<16x128xf32>
    %6 = arith.mulf %5, %5 : vector<16x128xf32>
    %7 = arith.mulf %5, %6 : vector<16x128xf32>
    %cst_5 = arith.constant 4.471500e-02 : f32
    %8 = vector.broadcast %cst_5 : f32 to vector<16x128xf32>
    %9 = arith.mulf %8, %7 : vector<16x128xf32>
    %10 = arith.addf %5, %9 : vector<16x128xf32>
    %cst_6 = arith.constant 0.797884583 : f32
    %11 = vector.broadcast %cst_6 : f32 to vector<16x128xf32>
    %12 = arith.mulf %11, %10 : vector<16x128xf32>
    %13 = math.tanh %12 : vector<16x128xf32>
    %cst_7 = arith.constant 1.000000e+00 : f32
    %14 = vector.broadcast %cst_7 : f32 to vector<16x128xf32>
    %15 = arith.addf %14, %13 : vector<16x128xf32>
    %cst_8 = arith.constant 5.000000e-01 : f32
    %16 = vector.broadcast %cst_8 : f32 to vector<16x128xf32>
    %17 = arith.mulf %16, %15 : vector<16x128xf32>
    %18 = arith.mulf %5, %17 : vector<16x128xf32>
    %19 = arith.truncf %18 : vector<16x128xf32> to vector<16x128xbf16>
    %c0_9 = arith.constant 0 : index
    %c0_10 = arith.constant 0 : index
    %20 = vector.load %arg4[%c0_9, %c0_10] : memref<128x64xbf16, #tpu.memory_space<vmem>>, vector<128x64xbf16>
    %cst_11 = arith.constant dense<0.000000e+00> : vector<16x64xf32>
    %21 = tpu.matmul %19, %20, %cst_11 {dimension_numbers = #tpu.dot_dimension_numbers<[1], [0], [0], [1], [0, 0, 1, 1], [], []>} : vector<16x128xbf16>, vector<128x64xbf16>, vector<16x64xf32> -> vector<16x64xf32>
    %c0_12 = arith.constant 0 : index
    %c0_13 = arith.constant 0 : index
    %22 = vector.load %arg5[%c0_12, %c0_13] : memref<1x64xf32, #tpu.memory_space<vmem>>, vector<1x64xf32>
    %23 = vector.broadcast %22 : vector<1x64xf32> to vector<16x64xf32>
    %24 = arith.addf %21, %23 : vector<16x64xf32>
    %25 = arith.extf %0 : vector<16x64xbf16> to vector<16x64xf32>
    %26 = arith.addf %25, %24 : vector<16x64xf32>
    %c0_14 = arith.constant 0 : index
    %c0_15 = arith.constant 0 : index
    %27 = vector.load %arg6[%c0_14, %c0_15] : memref<1x64xf32, #tpu.memory_space<vmem>>, vector<1x64xf32>
    %c0_16 = arith.constant 0 : index
    %c0_17 = arith.constant 0 : index
    %28 = vector.load %arg7[%c0_16, %c0_17] : memref<1x64xf32, #tpu.memory_space<vmem>>, vector<1x64xf32>
    %cst_18 = arith.constant dense<0.000000e+00> : vector<16xf32>
    %29 = vector.multi_reduction <add>, %26, %cst_18 [1] : vector<16x64xf32> to vector<16xf32>
    %30 = vector.shape_cast %29 : vector<16xf32> to vector<16x1xf32>
    %cst_19 = arith.constant 6.400000e+01 : f32
    %31 = vector.broadcast %cst_19 : f32 to vector<16x1xf32>
    %32 = arith.divf %30, %31 : vector<16x1xf32>
    %33 = vector.broadcast %32 : vector<16x1xf32> to vector<16x64xf32>
    %34 = arith.subf %26, %33 : vector<16x64xf32>
    %35 = arith.mulf %34, %34 : vector<16x64xf32>
    %cst_20 = arith.constant dense<0.000000e+00> : vector<16xf32>
    %36 = vector.multi_reduction <add>, %35, %cst_20 [1] : vector<16x64xf32> to vector<16xf32>
    %37 = vector.shape_cast %36 : vector<16xf32> to vector<16x1xf32>
    %cst_21 = arith.constant 6.400000e+01 : f32
    %38 = vector.broadcast %cst_21 : f32 to vector<16x1xf32>
    %39 = arith.divf %37, %38 : vector<16x1xf32>
    %40 = vector.broadcast %32 : vector<16x1xf32> to vector<16x64xf32>
    %41 = arith.subf %26, %40 : vector<16x64xf32>
    %cst_22 = arith.constant 9.99999996E-13 : f32
    %42 = vector.broadcast %cst_22 : f32 to vector<16x1xf32>
    %43 = arith.addf %39, %42 : vector<16x1xf32>
    %44 = math.rsqrt %43 : vector<16x1xf32>
    %45 = vector.broadcast %44 : vector<16x1xf32> to vector<16x64xf32>
    %46 = arith.mulf %41, %45 : vector<16x64xf32>
    %47 = vector.broadcast %27 : vector<1x64xf32> to vector<16x64xf32>
    %48 = arith.mulf %46, %47 : vector<16x64xf32>
    %49 = vector.broadcast %28 : vector<1x64xf32> to vector<16x64xf32>
    %50 = arith.addf %48, %49 : vector<16x64xf32>
    %51 = arith.truncf %50 : vector<16x64xf32> to vector<16x64xbf16>
    %c0_23 = arith.constant 0 : index
    %c0_24 = arith.constant 0 : index
    %52 = vector.load %arg8[%c0_23, %c0_24] : memref<16x64xbf16, #tpu.memory_space<vmem>>, vector<16x64xbf16>
    tpu.vector_store %arg8[%c0_23, %c0_24], %51 {strides = array<i32>} : memref<16x64xbf16, #tpu.memory_space<vmem>>, vector<16x64xbf16>,
    return
  }
  func.func @transform_0(%arg0: i32) -> (i32, i32) {
    %c0_i32 = arith.constant 0 : i32
    %c0_i32_0 = arith.constant 0 : i32
    return %arg0, %c0_i32 : i32, i32
  }
  func.func @transform_1(%arg0: i32) -> (i32, i32) {
    %c0_i32 = arith.constant 0 : i32
    %c0_i32_0 = arith.constant 0 : i32
    %c0_i32_1 = arith.constant 0 : i32
    return %c0_i32, %c0_i32_0 : i32, i32
  }
  func.func @transform_2(%arg0: i32) -> (i32, i32) {
    %c0_i32 = arith.constant 0 : i32
    %c0_i32_0 = arith.constant 0 : i32
    %c0_i32_1 = arith.constant 0 : i32
    return %c0_i32, %c0_i32_0 : i32, i32
  }
  func.func @transform_3(%arg0: i32) -> (i32, i32) {
    %c0_i32 = arith.constant 0 : i32
    %c0_i32_0 = arith.constant 0 : i32
    %c0_i32_1 = arith.constant 0 : i32
    return %c0_i32, %c0_i32_0 : i32, i32
  }
  func.func @transform_4(%arg0: i32) -> (i32, i32) {
    %c0_i32 = arith.constant 0 : i32
    %c0_i32_0 = arith.constant 0 : i32
    %c0_i32_1 = arith.constant 0 : i32
    return %c0_i32, %c0_i32_0 : i32, i32
  }
  func.func @transform_5(%arg0: i32) -> (i32, i32) {
    %c0_i32 = arith.constant 0 : i32
    %c0_i32_0 = arith.constant 0 : i32
    %c0_i32_1 = arith.constant 0 : i32
    return %c0_i32, %c0_i32_0 : i32, i32
  }
  func.func @transform_6(%arg0: i32) -> (i32, i32) {
    %c0_i32 = arith.constant 0 : i32
    %c0_i32_0 = arith.constant 0 : i32
    %c0_i32_1 = arith.constant 0 : i32
    return %c0_i32, %c0_i32_0 : i32, i32
  }
  func.func @transform_7(%arg0: i32) -> (i32, i32) {
    %c0_i32 = arith.constant 0 : i32
    %c0_i32_0 = arith.constant 0 : i32
    return %arg0, %c0_i32 : i32, i32
  }
}

</mosaic_0001>

<bundles_post_ra>
// kernel: reverse.5
= control target key start
LH: loop header
LB: loop body
LE: loop exit
PB: predicated region body
PF: predicated region fallthrough
CT: control target
= control target key end

     0   :  { %v55_v2 = vld [vmem:[#allocation1 + $0x8] sm:$0xf]  ;;  %v62_v3 = vld [vmem:[#allocation1] sm:$0xf]  ;;  %v72_v6 = vlaneseq  ;;  %s177_s0 = inlined_call_operand.vmem [shape: f32[2,64,3], index: 0, kind: input, shape index: {}]   ;;  %s178_s1 = inlined_call_operand.vmem [shape: f32[2,64,3], index: 1, kind: output, shape index: {}]  }
   0x1   :  { %v18_v0 = vld [vmem:[%s177_s0] sm:$0xf]  ;;  %v20_v1 = vld [vmem:[%s177_s0 + $0x4] sm:$0xf]  ;;  %57 = vst [vmem:[#allocation0 + $0x10] sm:$0xf] %v55_v2 }
   0x2   :  { %19 = vst [vmem:[#allocation1 + $0x4] sm:$0xf] %v18_v0  ;;  %21 = vst [vmem:[#allocation1 + $0xc] sm:$0xf] %v20_v1  ;;  %v73_v11 = vshrl.u32 %v72_v6, 7 }
   0x3   :  { %63 = vst [vmem:[#allocation0] sm:$0xf] %v62_v3 }
   0x4   :  { %vm74_vm0 = vcmp.lt.s32.totalorder %v73_v11, 3 }
   0x8   :  { %v79_v7 = vld [vmem:[#allocation0 + $0x17] ss:$-1 sm:$0xff] }
   0x9   :  { %v50_v4 = vld [vmem:[#allocation1 + $0xc] sm:$0xf]  ;;  %v59_v5 = vld [vmem:[#allocation1 + $0x4] sm:$0xf]  ;;  %v80_v9 = vrot.slane %v79_v7, 5 }
   0xa   :  { %52 = vst [vmem:[#allocation0 + $0x18] sm:$0xf] %v50_v4  ;;  %61 = vst [vmem:[#allocation0 + $0x8] sm:$0xf] %v59_v5  ;;  %v65_v8 = vld [vmem:[#allocation0 + $0x7] ss:$-1 sm:$0xff] }
   0xb   :  { %v66_v10 = vrot.slane %v65_v8, 5  ;;  %81 = vst [vmem:[#allocation2 + $0x8] sm:$0xff] %v80_v9 }
   0xd   :  { %67 = vst [vmem:[#allocation2] sm:$0xff] %v66_v10 }
  0x11   :  { %v70_v12 = vld [vmem:[#allocation0 + $0xf] ss:$-1 sm:$0xff]  ;;  %v84_v13 = vld [vmem:[#allocation0 + $0x1f] ss:$-1 sm:$0xff] }
  0x12   :  { %v71_v14 = vrot.slane %v70_v12, 5  ;;  %v85_v15 = vrot.slane %v84_v13, 5 }
  0x14   :  { %75 = vst.msk [vmem:[#allocation2] sm:$0xff] %vm74_vm0, %v71_v14  ;;  %89 = vst.msk [vmem:[#allocation2 + $0x8] sm:$0xff] %vm74_vm0, %v85_v15 }
  0x1b   :  { %v93_v16 = vld [vmem:[#allocation2] sm:$0xf]  ;;  %v97_v17 = vld [vmem:[#allocation2 + $0x8] sm:$0xf] }
  0x1c   :  { %95 = vst [vmem:[#allocation3] sm:$0xf] %v93_v16  ;;  %100 = vst [vmem:[#allocation3 + $0x4] sm:$0xf] %v97_v17 }
  0x23   :  { %v116_v18 = vld [vmem:[#allocation3] sm:$0xff]  }
  0x24   :  { %117 = vst [vmem:[%s178_s1] sm:$0xff] %v116_v18  }

// kernel: m2bert_reranker_forward.7
= control target key start
LH: loop header
LB: loop body
LE: loop exit
PB: predicated region body
PF: predicated region fallthrough
CT: control target
= control target key end

     0   :  { %9 = vsyncpa [#allocation3], 0  ;;  %s407_s0 = inlined_call_operand.hbm [shape: f32[16,64], index: 0, kind: input, shape index: {}]   ;;  %s408_s1 = inlined_call_operand.hbm [shape: f32[16,1], index: 1, kind: input, shape index: {}]   ;;  %s409_s2 = inlined_call_operand.hbm [shape: f32[1,64], index: 2, kind: input, shape index: {}]   ;;  %s410_s3 = inlined_call_operand.hbm [shape: f32[1,64], index: 3, kind: input, shape index: {}]   ;;  %s411_s4 = inlined_call_operand.hbm [shape: bf16[16,64], index: 4, kind: output, shape index: {}]  }
   0x1   :  { %10 = vsyncpa [#allocation6], 0 }
   0x2   :  { %11 = vsyncpa [#allocation9], 0 }
   0x3   :  { %12 = vsyncpa [#allocation4], 0  ;;  %s301_s15 = smov [#allocation5]   ;;  %s302_s17 = smov [#allocation2]  }
   0x4   :  { %s30_s16 = sshll.u32 %s301_s15, 4  ;;  %s18_s18 = sshll.u32 %s302_s17, 4  ;;  %s31_s16 = int_to_ptr.vmem [resolvable:$true] %s30_s16  ;;  %s336_s18 = int_to_ptr.vmem [resolvable:$true] %s18_s18 }
   0x5   :  { %s183_s21 = scalar_lea.hbm %s408_s1, 256 }
   0x6   :  { %p184_p0 = scmp.ne.s32.totalorder %s408_s1, %s183_s21  ;;  %p187_p1 = scmp.lt.u32.totalorder %s183_s21, %s408_s1 }
   0x8   :  { %p189_p2 = pnand %p187_p1, %p184_p0 }
   0xa   :  { %192 = shalt.err (!%p189_p2)
}
   0xb   :  { %s193_s26 = scalar_lea.vmem %s31_s16, 256  ;;  %p198_p4 = scmp.lt.s32.totalorder %s31_s16, %s31_s16 }
   0xc   :  { %p194_p3 = scmp.ne.s32.totalorder %s31_s16, %s193_s26  ;;  %p199_p5 = scmp.lt.s32.totalorder %s193_s26, %s193_s26 }
   0xe   :  { %p200_p6 = por %p199_p5, %p198_p4 }
  0x10   :  { %p201_p7 = pnand %p200_p6, %p194_p3 }
  0x12   :  { %204 = shalt.err (!%p201_p7)
}
  0x13   :  { %s303_s27 = smov 128   ;;  %s304_s28 = smov 8  }
  0x14   :  { %36 = dma.hbm_to_vmem [thread:$0]  %s408_s1, 256, %s31_s16, [#allocation6], %s303_s27, %s303_s27, %s304_s28  }
  0x15   :  { %s205_s7 = scalar_lea.hbm %s407_s0, 256 }
  0x16   :  { %p206_p8 = scmp.ne.s32.totalorder %s407_s0, %s205_s7  ;;  %p209_p9 = scmp.lt.u32.totalorder %s205_s7, %s407_s0 }
  0x18   :  { %p211_p10 = pnand %p209_p9, %p206_p8 }
  0x1a   :  { %214 = shalt.err (!%p211_p10)
}
  0x1b   :  { %s215_s12 = scalar_lea.vmem %s336_s18, 256  ;;  %p220_p12 = scmp.lt.s32.totalorder %s336_s18, %s336_s18 }
  0x1c   :  { %p216_p11 = scmp.ne.s32.totalorder %s336_s18, %s215_s12  ;;  %p221_p13 = scmp.lt.s32.totalorder %s215_s12, %s215_s12 }
  0x1e   :  { %p222_p0 = por %p221_p13, %p220_p12 }
  0x20   :  { %p223_p1 = pnand %p222_p0, %p216_p11 }
  0x22   :  { %226 = shalt.err (!%p223_p1)
}
  0x23   :  { %24 = dma.hbm_to_vmem [thread:$0]  %s407_s0, 256, %s336_s18, [#allocation3], %s303_s27, %s303_s27, %s304_s28  }
  0x24   :  { %s305_s14 = smov [#allocation7]   ;;  %s306_s16 = smov [#allocation8]  }
  0x25   :  { %s43_s15 = sshll.u32 %s305_s14, 4  ;;  %s53_s17 = sshll.u32 %s306_s16, 4  ;;  %s44_s15 = int_to_ptr.vmem [resolvable:$true] %s43_s15  ;;  %s54_s17 = int_to_ptr.vmem [resolvable:$true] %s53_s17 }
  0x26   :  { %s227_s21 = scalar_lea.hbm %s409_s2, 16 }
  0x27   :  { %p228_p2 = scmp.ne.s32.totalorder %s409_s2, %s227_s21  ;;  %p231_p3 = scmp.lt.u32.totalorder %s227_s21, %s409_s2 }
  0x29   :  { %p233_p4 = pnand %p231_p3, %p228_p2 }
  0x2b   :  { %236 = shalt.err (!%p233_p4)
}
  0x2c   :  { %s237_s0 = scalar_lea.vmem %s44_s15, 16  ;;  %s241_s18 = scalar_lea.vmem %s44_s15, 32 }
  0x2d   :  { %p238_p5 = scmp.ne.s32.totalorder %s44_s15, %s237_s0  ;;  %p242_p6 = scmp.lt.s32.totalorder %s44_s15, %s44_s15 }
  0x2e   :  { %p243_p7 = scmp.lt.s32.totalorder %s241_s18, %s237_s0 }
  0x30   :  { %p244_p8 = por %p243_p7, %p242_p6 }
  0x32   :  { %p245_p9 = pnand %p244_p8, %p238_p5 }
  0x34   :  { %248 = shalt.err (!%p245_p9)
}
  0x35   :  { %46 = dma.hbm_to_vmem [thread:$0]  %s409_s2, 16, %s44_s15, [#allocation6]  }
  0x36   :  { %s249_s30 = scalar_lea.hbm %s410_s3, 16 }
  0x37   :  { %p250_p10 = scmp.ne.s32.totalorder %s410_s3, %s249_s30  ;;  %p253_p11 = scmp.lt.u32.totalorder %s249_s30, %s410_s3 }
  0x39   :  { %p255_p12 = pnand %p253_p11, %p250_p10 }
  0x3b   :  { %258 = shalt.err (!%p255_p12)
}
  0x3c   :  { %s259_s9 = scalar_lea.vmem %s54_s17, 16  ;;  %s263_s10 = scalar_lea.vmem %s54_s17, 32 }
  0x3d   :  { %p260_p13 = scmp.ne.s32.totalorder %s54_s17, %s259_s9  ;;  %p264_p0 = scmp.lt.s32.totalorder %s54_s17, %s54_s17 }
  0x3e   :  { %p265_p1 = scmp.lt.s32.totalorder %s263_s10, %s259_s9 }
  0x40   :  { %p266_p2 = por %p265_p1, %p264_p0 }
  0x42   :  { %p267_p3 = pnand %p266_p2, %p260_p13 }
  0x44   :  { %270 = shalt.err (!%p267_p3)
}
  0x45   :  { %56 = dma.hbm_to_vmem [thread:$0]  %s410_s3, 16, %s54_s17, [#allocation9]  }
  0x46   :  { %293 = dma.done.wait [#allocation3], 256  }
  0x47   :  { %294 = vsyncadd [#allocation3], 4294967040 }
  0x48   :  { %295 = dma.done.wait [#allocation6], 272  }
  0x49   :  { %296 = vsyncadd [#allocation6], 4294967024 }
  0x4a   :  { %297 = dma.done.wait [#allocation9], 16  }
  0x4b   :  { %298 = vsyncadd [#allocation9], 4294967280  ;;  %vm73_vm0 = vcmask 523264   ;;  %v69_v0 = vld [vmem:[#allocation2] sm:$0xff]  ;;  %v70_v1 = vld [vmem:[#allocation2 + $0x8] sm:$0xff]  ;;  %v307_v5 = vmov 0  }
  0x4c   :  { %v74_v2 = vsel %vm73_vm0, %v69_v0, 0.0  ;;  %v77_v3 = vsel %vm73_vm0, %v70_v1, 0.0  ;;  %v117_v4 = vld [vmem:[#allocation5] sm:$0xff]  ;;  %177 = vset.pattern.permute.xlu0 %v307_v5  ;;  %178 = vset.pattern.permute.xlu1 %v307_v5  ;;  %v118_v16 = vld [vmem:[#allocation5 + $0x8] sm:$0xff]  ;;  %v161_v24 = vld [vmem:[#allocation7] ss:$0 sm:$0xff] }
  0x4d   :  { %75 = vadd.xlane.f32.xlu0 %v74_v2  ;;  %v162_v26 = vld [vmem:[#allocation8] ss:$0 sm:$0xff]  ;;  %vm139_vm1 = vcmask 519168   ;;  %s308_s3 = smov [#allocation10]  }
  0x4e   :  { %s147_s12 = sshll.u32 %s308_s3, 4  ;;  %s148_s12 = int_to_ptr.vmem [resolvable:$true] %s147_s12 }
  0x4f   :  { %s271_s1 = scalar_lea.vmem %s148_s12, 128  ;;  %p276_p5 = scmp.lt.s32.totalorder %s148_s12, %s148_s12 }
  0x50   :  { %p272_p4 = scmp.ne.s32.totalorder %s148_s12, %s271_s1  ;;  %p277_p6 = scmp.lt.s32.totalorder %s271_s1, %s271_s1 }
  0x51   :  { %78 = vadd.xlane.f32.xlu0 %v77_v3 }
  0x52   :  { %p278_p7 = por %p277_p6, %p276_p5 }
  0x54   :  { %p279_p8 = pnand %p278_p7, %p272_p4 }
  0x67   :  { %121 = vperm.xlu0 %177, %v117_v4  }
  0xda   :  { %v76_v6 = vpop.xlane.xlu0 %75 }
  0xdb   :  { %v81_v7 = vmul.f32 0.015625, %v76_v6 }
  0xdd   :  { %v83_v8 = vsub.f32 %v69_v0, %v81_v7 }
  0xde   :  { %v79_v9 = vpop.xlane.xlu0 %78 }
  0xdf   :  { %v82_v10 = vmul.f32 0.015625, %v79_v9  ;;  %v85_v11 = vmul.f32 %v83_v8, %v83_v8 }
  0xe1   :  { %v84_v12 = vsub.f32 %v70_v1, %v82_v10  ;;  %v87_v13 = vsel %vm73_vm0, %v85_v11, 0.0 }
  0xe2   :  { %88 = vadd.xlane.f32.xlu1 %v87_v13 }
  0xe3   :  { %v86_v14 = vmul.f32 %v84_v12, %v84_v12 }
  0xe5   :  { %v90_v15 = vsel %vm73_vm0, %v86_v14, 0.0 }
  0xe6   :  { %91 = vadd.xlane.f32.xlu1 %v90_v15  ;;  %v122_v29 = vpop.permute.xlu0 %121 }
  0xf7   :  { %126 = vperm.xlu1 %178, %v118_v16  }
 0x16f   :  { %v89_v17 = vpop.xlane.xlu1 %88 }
 0x170   :  { %v93_v18 = vmul.f32 0.015625, %v89_v17 }
 0x172   :  { %v95_v19 = vadd.f32 1e-12, %v93_v18 }
 0x173   :  { %v92_v20 = vpop.xlane.xlu1 %91 }
 0x174   :  { %179 = vrsqrt.f32 %v95_v19  ;;  %v94_v21 = vmul.f32 0.015625, %v92_v20 }
 0x176   :  { %v96_v22 = vadd.f32 1e-12, %v94_v21 }
 0x177   :  { %v127_v34 = vpop.permute.xlu1 %126 }
 0x178   :  { %181 = vrsqrt.f32 %v96_v22 }
 0x17e   :  { %v180_v23 = vpop.eup %179 }
 0x17f   :  { %v99_v25 = vmul.f32 %v180_v23, %v83_v8 }
 0x181   :  { %v107_v27 = vmul.f32 %v161_v24, %v99_v25 }
 0x182   :  { %v182_v28 = vpop.eup %181 }
 0x183   :  { %v115_v30 = vadd.f32 %v162_v26, %v107_v27  ;;  %v100_v31 = vmul.f32 %v182_v28, %v84_v12 }
 0x185   :  { %v129_v32 = vmul.f32 %v122_v29, %v115_v30  ;;  %v108_v33 = vmul.f32 %v161_v24, %v100_v31 }
 0x187   :  { %v165_v35 = vpack.c.bf16 %v129_v32, %v129_v32  ;;  %v116_v36 = vadd.f32 %v162_v26, %v108_v33 }
 0x189   :  { %140 = vst.msk [vmem:[#allocation10] sm:$0xf] %vm139_vm1, %v165_v35  ;;  %v130_v37 = vmul.f32 %v127_v34, %v116_v36 }
 0x18b   :  { %v166_v38 = vpack.c.bf16 %v130_v37, %v130_v37 }
 0x18d   :  { %141 = vst.msk [vmem:[#allocation10 + $0x4] sm:$0xf] %vm139_vm1, %v166_v38 }
 0x18e   :  { %282 = shalt.err (!%p279_p8)
}
 0x18f   :  { %s283_s15 = scalar_lea.hbm %s411_s4, 128 }
 0x190   :  { %p284_p9 = scmp.ne.s32.totalorder %s411_s4, %s283_s15  ;;  %p287_p10 = scmp.lt.u32.totalorder %s283_s15, %s411_s4 }
 0x192   :  { %p289_p11 = pnand %p287_p10, %p284_p9 }
 0x194   :  { %292 = shalt.err (!%p289_p11)
}
 0x195   :  { %s309_s21 = smov 64   ;;  %s310_s22 = smov 4  }
 0x196   :  { %153 = dma.vmem_to_hbm [thread:$0]  %s148_s12, 128, %s411_s4, [#allocation4], %s309_s21, %s309_s21, %s310_s22  }
 0x197   :  { %299 = dma.done.wait [#allocation4], 128  }
 0x198   :  { %300 = vsyncadd [#allocation4], 4294967168 }
 0x199   :  { %157 = vsyncpa [#allocation3], 1 }
 0x19a   :  { %158 = vsyncpa [#allocation6], 1 }
 0x19b   :  { %159 = vsyncpa [#allocation9], 1 }
 0x19c   :  { %160 = vsyncpa [#allocation4], 1 }

// kernel: m2bert_reranker_forward.8
= control target key start
LH: loop header
LB: loop body
LE: loop exit
PB: predicated region body
PF: predicated region fallthrough
CT: control target
= control target key end

     0   :  { %14 = vsyncpa [#allocation3], 0  ;;  %s939_s0 = inlined_call_operand.hbm [shape: bf16[16,64], index: 0, kind: input, shape index: {}]   ;;  %s940_s1 = inlined_call_operand.hbm [shape: bf16[64,64], index: 1, kind: input, shape index: {}]   ;;  %s941_s2 = inlined_call_operand.hbm [shape: bf16[64,64], index: 2, kind: input, shape index: {}]   ;;  %s942_s3 = inlined_call_operand.hbm [shape: bf16[64,64], index: 3, kind: input, shape index: {}]   ;;  %s943_s4 = inlined_call_operand.hbm [shape: f32[1,64], index: 4, kind: input, shape index: {}]   ;;  %s944_s5 = inlined_call_operand.hbm [shape: f32[1,64], index: 5, kind: input, shape index: {}]   ;;  %s945_s6 = inlined_call_operand.hbm [shape: f32[1,64], index: 6, kind: input, shape index: {}]   ;;  %s946_s7 = inlined_call_operand.hbm [shape: f32[16,64], index: 7, kind: output, shape index: {0}]   ;;  %s947_s8 = inlined_call_operand.hbm [shape: bf16[16,64], index: 8, kind: output, shape index: {1}]  }
   0x1   :  { %15 = vsyncpa [#allocation6], 0 }
   0x2   :  { %16 = vsyncpa [#allocation9], 0 }
   0x3   :  { %17 = vsyncpa [#allocation12], 0 }
   0x4   :  { %18 = vsyncpa [#allocation4], 0 }
   0x5   :  { %19 = vsyncpa [#allocation16], 0  ;;  %s734_s27 = smov [#allocation5]   ;;  %s735_s29 = smov [#allocation8]  }
   0x6   :  { %s37_s28 = sshll.u32 %s734_s27, 4  ;;  %s61_s30 = sshll.u32 %s735_s29, 4  ;;  %s38_s28 = int_to_ptr.vmem [resolvable:$true] %s37_s28  ;;  %s794_s30 = int_to_ptr.vmem [resolvable:$true] %s61_s30 }
   0x7   :  { %s524_s11 = scalar_lea.hbm %s940_s1, 512 }
   0x8   :  { %p525_p0 = scmp.ne.s32.totalorder %s940_s1, %s524_s11  ;;  %p528_p1 = scmp.lt.u32.totalorder %s524_s11, %s940_s1 }
   0xa   :  { %p530_p2 = pnand %p528_p1, %p525_p0 }
   0xc   :  { %533 = shalt.err (!%p530_p2)
}
   0xd   :  { %s534_s16 = scalar_lea.vmem %s38_s28, 512  ;;  %p539_p4 = scmp.lt.s32.totalorder %s38_s28, %s38_s28 }
   0xe   :  { %p535_p3 = scmp.ne.s32.totalorder %s38_s28, %s534_s16  ;;  %p540_p5 = scmp.lt.s32.totalorder %s534_s16, %s534_s16 }
  0x10   :  { %p541_p6 = por %p540_p5, %p539_p4 }
  0x12   :  { %p542_p7 = pnand %p541_p6, %p535_p3 }
  0x14   :  { %545 = shalt.err (!%p542_p7)
}
  0x15   :  { %s736_s17 = smov 64   ;;  %s737_s18 = smov 4  }
  0x16   :  { %43 = dma.hbm_to_vmem [thread:$0]  %s940_s1, 512, %s38_s28, [#allocation6], %s736_s17, %s736_s17, %s737_s18  }
  0x17   :  { %s546_s23 = scalar_lea.hbm %s942_s3, 512 }
  0x18   :  { %p547_p8 = scmp.ne.s32.totalorder %s942_s3, %s546_s23  ;;  %p550_p9 = scmp.lt.u32.totalorder %s546_s23, %s942_s3 }
  0x1a   :  { %p552_p10 = pnand %p550_p9, %p547_p8 }
  0x1c   :  { %555 = shalt.err (!%p552_p10)
}
  0x1d   :  { %s556_s29 = scalar_lea.vmem %s794_s30, 512  ;;  %p561_p12 = scmp.lt.s32.totalorder %s794_s30, %s794_s30 }
  0x1e   :  { %p557_p11 = scmp.ne.s32.totalorder %s794_s30, %s556_s29  ;;  %p562_p13 = scmp.lt.s32.totalorder %s556_s29, %s556_s29 }
  0x20   :  { %p563_p0 = por %p562_p13, %p561_p12 }
  0x22   :  { %p564_p1 = pnand %p563_p0, %p557_p11 }
  0x24   :  { %567 = shalt.err (!%p564_p1)
}
  0x25   :  { %67 = dma.hbm_to_vmem [thread:$0]  %s942_s3, 512, %s794_s30, [#allocation9], %s736_s17, %s736_s17, %s737_s18  }
  0x26   :  { %s738_s9 = smov [#allocation11]   ;;  %s739_s11 = smov [#allocation2]  }
  0x27   :  { %s84_s10 = sshll.u32 %s738_s9, 4  ;;  %s25_s12 = sshll.u32 %s739_s11, 4  ;;  %s85_s10 = int_to_ptr.vmem [resolvable:$true] %s84_s10  ;;  %s831_s12 = int_to_ptr.vmem [resolvable:$true] %s25_s12 }
  0x28   :  { %s568_s15 = scalar_lea.hbm %s944_s5, 16 }
  0x29   :  { %p569_p2 = scmp.ne.s32.totalorder %s944_s5, %s568_s15  ;;  %p572_p3 = scmp.lt.u32.totalorder %s568_s15, %s944_s5 }
  0x2b   :  { %p574_p4 = pnand %p572_p3, %p569_p2 }
  0x2d   :  { %577 = shalt.err (!%p574_p4)
}
  0x2e   :  { %s578_s3 = scalar_lea.vmem %s85_s10, 16  ;;  %s582_s30 = scalar_lea.vmem %s85_s10, 32 }
  0x2f   :  { %p579_p5 = scmp.ne.s32.totalorder %s85_s10, %s578_s3  ;;  %p583_p6 = scmp.lt.s32.totalorder %s85_s10, %s85_s10 }
  0x30   :  { %p584_p7 = scmp.lt.s32.totalorder %s582_s30, %s578_s3 }
  0x32   :  { %p585_p8 = por %p584_p7, %p583_p6 }
  0x34   :  { %p586_p9 = pnand %p585_p8, %p579_p5 }
  0x36   :  { %589 = shalt.err (!%p586_p9)
}
  0x37   :  { %87 = dma.hbm_to_vmem [thread:$0]  %s944_s5, 16, %s85_s10, [#allocation12]  }
  0x38   :  { %s590_s26 = scalar_lea.hbm %s939_s0, 128 }
  0x39   :  { %p591_p10 = scmp.ne.s32.totalorder %s939_s0, %s590_s26  ;;  %p594_p11 = scmp.lt.u32.totalorder %s590_s26, %s939_s0 }
  0x3b   :  { %p596_p12 = pnand %p594_p11, %p591_p10 }
  0x3d   :  { %599 = shalt.err (!%p596_p12)
}
  0x3e   :  { %s600_s9 = scalar_lea.vmem %s831_s12, 128  ;;  %p605_p0 = scmp.lt.s32.totalorder %s831_s12, %s831_s12 }
  0x3f   :  { %p601_p13 = scmp.ne.s32.totalorder %s831_s12, %s600_s9  ;;  %p606_p1 = scmp.lt.s32.totalorder %s600_s9, %s600_s9 }
  0x41   :  { %p607_p2 = por %p606_p1, %p605_p0 }
  0x43   :  { %p608_p3 = pnand %p607_p2, %p601_p13 }
  0x45   :  { %611 = shalt.err (!%p608_p3)
}
  0x46   :  { %31 = dma.hbm_to_vmem [thread:$0]  %s939_s0, 128, %s831_s12, [#allocation3], %s736_s17, %s736_s17, %s737_s18  }
  0x47   :  { %s740_s11 = smov [#allocation7]   ;;  %s741_s14 = smov [#allocation10]  }
  0x48   :  { %s49_s13 = sshll.u32 %s740_s11, 4  ;;  %s74_s15 = sshll.u32 %s741_s14, 4  ;;  %s50_s13 = int_to_ptr.vmem [resolvable:$true] %s49_s13  ;;  %s75_s15 = int_to_ptr.vmem [resolvable:$true] %s74_s15 }
  0x49   :  { %s612_s20 = scalar_lea.hbm %s941_s2, 512 }
  0x4a   :  { %p613_p4 = scmp.ne.s32.totalorder %s941_s2, %s612_s20  ;;  %p616_p5 = scmp.lt.u32.totalorder %s612_s20, %s941_s2 }
  0x4c   :  { %p618_p6 = pnand %p616_p5, %p613_p4 }
  0x4e   :  { %621 = shalt.err (!%p618_p6)
}
  0x4f   :  { %s622_s0 = scalar_lea.vmem %s50_s13, 512  ;;  %p627_p8 = scmp.lt.s32.totalorder %s50_s13, %s50_s13 }
  0x50   :  { %p623_p7 = scmp.ne.s32.totalorder %s50_s13, %s622_s0  ;;  %p628_p9 = scmp.lt.s32.totalorder %s622_s0, %s622_s0 }
  0x52   :  { %p629_p10 = por %p628_p9, %p627_p8 }
  0x54   :  { %p630_p11 = pnand %p629_p10, %p623_p7 }
  0x56   :  { %633 = shalt.err (!%p630_p11)
}
  0x57   :  { %55 = dma.hbm_to_vmem [thread:$0]  %s941_s2, 512, %s50_s13, [#allocation6], %s736_s17, %s736_s17, %s737_s18  }
  0x58   :  { %s634_s26 = scalar_lea.hbm %s943_s4, 16 }
  0x59   :  { %p635_p12 = scmp.ne.s32.totalorder %s943_s4, %s634_s26  ;;  %p638_p13 = scmp.lt.u32.totalorder %s634_s26, %s943_s4 }
  0x5b   :  { %p640_p0 = pnand %p638_p13, %p635_p12 }
  0x5d   :  { %643 = shalt.err (!%p640_p0)
}
  0x5e   :  { %s644_s9 = scalar_lea.vmem %s75_s15, 16  ;;  %s648_s5 = scalar_lea.vmem %s75_s15, 32 }
  0x5f   :  { %p645_p1 = scmp.ne.s32.totalorder %s75_s15, %s644_s9  ;;  %p649_p2 = scmp.lt.s32.totalorder %s75_s15, %s75_s15 }
  0x60   :  { %p650_p3 = scmp.lt.s32.totalorder %s648_s5, %s644_s9 }
  0x62   :  { %p651_p4 = por %p650_p3, %p649_p2 }
  0x64   :  { %p652_p5 = pnand %p651_p4, %p645_p1 }
  0x66   :  { %655 = shalt.err (!%p652_p5)
}
  0x67   :  { %77 = dma.hbm_to_vmem [thread:$0]  %s943_s4, 16, %s75_s15, [#allocation9]  }
  0x68   :  { %s742_s11 = smov [#allocation13]   ;;  %s656_s19 = scalar_lea.hbm %s945_s6, 16 }
  0x69   :  { %s94_s13 = sshll.u32 %s742_s11, 4  ;;  %p657_p6 = scmp.ne.s32.totalorder %s945_s6, %s656_s19  ;;  %s95_s13 = int_to_ptr.vmem [resolvable:$true] %s94_s13 }
  0x6a   :  { %p660_p7 = scmp.lt.u32.totalorder %s656_s19, %s945_s6 }
  0x6c   :  { %p662_p8 = pnand %p660_p7, %p657_p6 }
  0x6e   :  { %665 = shalt.err (!%p662_p8)
}
  0x6f   :  { %s666_s22 = scalar_lea.vmem %s95_s13, 16  ;;  %s670_s4 = scalar_lea.vmem %s95_s13, 32 }
  0x70   :  { %p667_p9 = scmp.ne.s32.totalorder %s95_s13, %s666_s22  ;;  %p671_p10 = scmp.lt.s32.totalorder %s95_s13, %s95_s13 }
  0x71   :  { %p672_p11 = scmp.lt.s32.totalorder %s670_s4, %s666_s22 }
  0x73   :  { %p673_p12 = por %p672_p11, %p671_p10 }
  0x75   :  { %p674_p13 = pnand %p673_p12, %p667_p9 }
  0x77   :  { %677 = shalt.err (!%p674_p13)
}
  0x78   :  { %97 = dma.hbm_to_vmem [thread:$0]  %s945_s6, 16, %s95_s13, [#allocation12]  }
  0x79   :  { %722 = dma.done.wait [#allocation3], 128  }
  0x7a   :  { %723 = vsyncadd [#allocation3], 4294967168 }
  0x7b   :  { %724 = dma.done.wait [#allocation6], 1024  }
  0x7c   :  { %725 = vsyncadd [#allocation6], 4294966272 }
  0x7d   :  { %726 = dma.done.wait [#allocation9], 528  }
  0x7e   :  { %727 = vsyncadd [#allocation9], 4294966768 }
  0x7f   :  { %728 = dma.done.wait [#allocation12], 32  }
  0x80   :  { %729 = vsyncadd [#allocation12], 4294967264  ;;  %v743_v0 = vmov 0.0   ;;  %vm744_vm0 = vmmov 0   ;;  %v511_v1 = vld [vmem:[#allocation5] sm:$0xff]   ;;  %v512_v2 = vld [vmem:[#allocation5 + $0x8] sm:$0xff]  }
  0x81   :  { %460 = vmatprep.subr.bf16.mxu0 %v743_v0  ;;  %472 = vmatprep.subr.bf16.mxu1 %v743_v0  ;;  %v515_v3 = vld [vmem:[#allocation7] sm:$0xff]   ;;  %v513_v4 = vld [vmem:[#allocation5 + $0x10] sm:$0xff]   ;;  %v518_v5 = vld [vmem:[#allocation7 + $0x8] sm:$0xff]   ;;  %vm166_vm1 = vcmask 523264   ;;  %vm383_vm2 = vcmask 519168   ;;  %s745_s6 = smov [#allocation15]  }
  0x82   :  { %468 = vmatprep.mubr.msk.bf16.mxu0 %vm744_vm0, %v743_v0  ;;  %480 = vmatprep.mubr.msk.bf16.mxu1 %vm744_vm0, %v743_v0  ;;  %v514_v6 = vld [vmem:[#allocation5 + $0x18] sm:$0xff]   ;;  %v520_v7 = vld [vmem:[#allocation7 + $0x10] sm:$0xff]   ;;  %v517_v9 = vld [vmem:[#allocation8] sm:$0xff]   ;;  %s403_s12 = sshll.u32 %s745_s6, 4  ;;  %s404_s12 = int_to_ptr.vmem [resolvable:$true] %s403_s12 }
  0x83   :  { %461 = vmatpush3.bf16.msra.mxu0 %v511_v1  ;;  %473 = vmatpush3.bf16.msra.mxu1 %v515_v3  ;;  %v516_v8 = vld [vmem:[#allocation2] sm:$0xff]   ;;  %v519_v11 = vld [vmem:[#allocation8 + $0x8] sm:$0xff]   ;;  %v521_v12 = vld [vmem:[#allocation8 + $0x10] sm:$0xff]   ;;  %s678_s23 = scalar_lea.vmem %s404_s12, 128  ;;  %p683_p1 = scmp.lt.s32.totalorder %s404_s12, %s404_s12 }
  0x84   :  { %462 = vmatprep.subr.bf16.mxu0 %v743_v0  ;;  %474 = vmatprep.subr.bf16.mxu1 %v743_v0  ;;  %v522_v10 = vld [vmem:[#allocation7 + $0x18] sm:$0xff]   ;;  %v429_v17 = vld [vmem:[#allocation11] ss:$0 sm:$0xff]  ;;  %p679_p0 = scmp.ne.s32.totalorder %s404_s12, %s678_s23  ;;  %p684_p2 = scmp.lt.s32.totalorder %s678_s23, %s678_s23 }
  0x85   :  { %v523_v13 = vld [vmem:[#allocation8 + $0x18] sm:$0xff]  }
  0x86   :  { %p685_p3 = por %p684_p2, %p683_p1 }
  0x87   :  { %463 = vmatpush3.bf16.msra.mxu0 %v512_v2  ;;  %475 = vmatpush3.bf16.msra.mxu1 %v518_v5 }
  0x88   :  { %464 = vmatprep.subr.bf16.mxu0 %v743_v0  ;;  %476 = vmatprep.subr.bf16.mxu1 %v743_v0  ;;  %p686_p4 = pnand %p685_p3, %p679_p0 }
  0x8b   :  { %465 = vmatpush3.bf16.msra.mxu0 %v513_v4  ;;  %477 = vmatpush3.bf16.msra.mxu1 %v520_v7 }
  0x8c   :  { %466 = vmatprep.subr.bf16.mxu0 %v743_v0  ;;  %478 = vmatprep.subr.bf16.mxu1 %v743_v0 }
  0x8f   :  { %467 = vmatpush3.bf16.msra.mxu0 %v514_v6  ;;  %479 = vmatpush3.bf16.msra.mxu1 %v522_v10 }
  0x90   :  { %484 = vmatprep.subr.bf16.mxu0 %v743_v0 }
  0x92   :  { %469 = vmatmul.mubr.msk.bf16.vlgmr.msra.gmra.mrb[0].mxu0 %vm166_vm1, %v516_v8  ;;  %481 = vmatmul.mubr.msk.bf16.vlgmr.msra.gmra.mrb[0].mxu1 %vm166_vm1, %v516_v8 }
  0x93   :  { %485 = vmatpush3.bf16.msra.mxu0 %v517_v9  ;;  %492 = vmatprep.mubr.msk.bf16.mxu0 %vm744_vm0, %v743_v0 }
  0x94   :  { %486 = vmatprep.subr.bf16.mxu0 %v743_v0 }
  0x97   :  { %487 = vmatpush3.bf16.msra.mxu0 %v519_v11 }
  0x98   :  { %488 = vmatprep.subr.bf16.mxu0 %v743_v0 }
  0x9b   :  { %489 = vmatpush3.bf16.msra.mxu0 %v521_v12 }
  0x9c   :  { %490 = vmatprep.subr.bf16.mxu0 %v743_v0 }
  0x9f   :  { %491 = vmatpush3.bf16.msra.mxu0 %v523_v13 }
  0xa2   :  { %493 = vmatmul.mubr.msk.bf16.vlgmr.msra.gmra.mrb[4].mxu0 %vm166_vm1, %v516_v8 }
 0x165   :  { %v204_v14 = vpop.f32.mrb[0].mxu0  ;;  %v284_v19 = vpop.f32.mrb[0].mxu1 }
 0x166   :  { %v470_v15 = vpop.f32.mrb[1].mxu0  ;;  %v285_v20 = vadd.f32 %v429_v17, %v284_v19  ;;  %v482_v21 = vpop.f32.mrb[1].mxu1 }
 0x167   :  { %v207_v16 = vpop.f32.mrb[2].mxu0  ;;  %v287_v22 = vpop.f32.mrb[2].mxu1 }
 0x168   :  { %v471_v18 = vpop.f32.mrb[3].mxu0  ;;  %v443_v23 = vpack.c.bf16 %v285_v20, %v285_v20  ;;  %v288_v24 = vadd.f32 %v429_v17, %v287_v22  ;;  %v483_v25 = vpop.f32.mrb[3].mxu1 }
 0x16a   :  { %v444_v26 = vpack.c.bf16 %v288_v24, %v288_v24  ;;  %384 = vst.msk [vmem:[#allocation15] sm:$0xf] %vm383_vm2, %v443_v23 }
 0x16c   :  { %385 = vst.msk [vmem:[#allocation15 + $0x4] sm:$0xf] %vm383_vm2, %v444_v26 }
 0x16d   :  { %689 = shalt.err (!%p686_p4)
}
 0x16e   :  { %s690_s26 = scalar_lea.hbm %s947_s8, 128 }
 0x16f   :  { %p691_p5 = scmp.ne.s32.totalorder %s947_s8, %s690_s26  ;;  %p694_p6 = scmp.lt.u32.totalorder %s690_s26, %s947_s8 }
 0x171   :  { %p696_p7 = pnand %p694_p6, %p691_p5 }
 0x173   :  { %699 = shalt.err (!%p696_p7)
}
 0x174   :  { %409 = dma.vmem_to_hbm [thread:$0]  %s404_s12, 128, %s947_s8, [#allocation16], %s736_s17, %s736_s17, %s737_s18   ;;  %v422_v27 = vld [vmem:[#allocation10] ss:$0 sm:$0xff]  ;;  %v435_v28 = vld [vmem:[#allocation13] ss:$0 sm:$0xff] }
 0x175   :  { %v364_v29 = vpop.f32.mrb[4].mxu0  ;;  %v205_v30 = vadd.f32 %v422_v27, %v204_v14  ;;  %s746_s2 = smov [#allocation14]   ;;  %v208_v34 = vadd.f32 %v422_v27, %v207_v16 }
 0x176   :  { %v365_v31 = vadd.f32 %v435_v28, %v364_v29  ;;  %v494_v32 = vpop.f32.mrb[5].mxu0  ;;  %s391_s10 = sshll.u32 %s746_s2, 4  ;;  %s392_s10 = int_to_ptr.vmem [resolvable:$true] %s391_s10 }
 0x177   :  { %v367_v33 = vpop.f32.mrb[6].mxu0  ;;  %s700_s8 = scalar_lea.vmem %s392_s10, 256  ;;  %p705_p9 = scmp.lt.s32.totalorder %s392_s10, %s392_s10 }
 0x178   :  { %v371_v35 = vmul.f32 %v365_v31, %v205_v30  ;;  %v368_v36 = vadd.f32 %v435_v28, %v367_v33  ;;  %v495_v37 = vpop.f32.mrb[7].mxu0  ;;  %p701_p8 = scmp.ne.s32.totalorder %s392_s10, %s700_s8  ;;  %p706_p10 = scmp.lt.s32.totalorder %s700_s8, %s700_s8 }
 0x17a   :  { %373 = vst.msk [vmem:[#allocation14] sm:$0xff] %vm166_vm1, %v371_v35  ;;  %v372_v38 = vmul.f32 %v368_v36, %v208_v34  ;;  %p707_p11 = por %p706_p10, %p705_p9 }
 0x17c   :  { %374 = vst.msk [vmem:[#allocation14 + $0x8] sm:$0xff] %vm166_vm1, %v372_v38  ;;  %p708_p12 = pnand %p707_p11, %p701_p8 }
 0x17e   :  { %711 = shalt.err (!%p708_p12)
}
 0x17f   :  { %s712_s11 = scalar_lea.hbm %s946_s7, 256 }
 0x180   :  { %p713_p13 = scmp.ne.s32.totalorder %s946_s7, %s712_s11  ;;  %p716_p0 = scmp.lt.u32.totalorder %s712_s11, %s946_s7 }
 0x182   :  { %p718_p1 = pnand %p716_p0, %p713_p13 }
 0x184   :  { %721 = shalt.err (!%p718_p1)
}
 0x185   :  { %s747_s20 = smov 128   ;;  %s748_s21 = smov 8  }
 0x186   :  { %397 = dma.vmem_to_hbm [thread:$0]  %s392_s10, 256, %s946_s7, [#allocation4], %s747_s20, %s747_s20, %s748_s21  }
 0x187   :  { %730 = dma.done.wait [#allocation4], 256  }
 0x188   :  { %731 = vsyncadd [#allocation4], 4294967040 }
 0x189   :  { %732 = dma.done.wait [#allocation16], 128  }
 0x18a   :  { %733 = vsyncadd [#allocation16], 4294967168 }
 0x18b   :  { %416 = vsyncpa [#allocation3], 1 }
 0x18c   :  { %417 = vsyncpa [#allocation6], 1 }
 0x18d   :  { %418 = vsyncpa [#allocation9], 1 }
 0x18e   :  { %419 = vsyncpa [#allocation12], 1 }
 0x18f   :  { %420 = vsyncpa [#allocation4], 1 }
 0x190   :  { %421 = vsyncpa [#allocation16], 1 }

// kernel: m2bert_reranker_forward.9
= control target key start
LH: loop header
LB: loop body
LE: loop exit
PB: predicated region body
PF: predicated region fallthrough
CT: control target
= control target key end

     0   :  { %12 = vsyncpa [#allocation3], 0  ;;  %s723_s0 = inlined_call_operand.hbm [shape: bf16[16,64], index: 0, kind: input, shape index: {}]   ;;  %s724_s1 = inlined_call_operand.hbm [shape: bf16[16,64], index: 1, kind: input, shape index: {}]   ;;  %s725_s2 = inlined_call_operand.hbm [shape: bf16[16,64], index: 2, kind: input, shape index: {}]   ;;  %s726_s3 = inlined_call_operand.hbm [shape: bf16[64,64], index: 3, kind: input, shape index: {}]   ;;  %s727_s4 = inlined_call_operand.hbm [shape: f32[1,64], index: 4, kind: input, shape index: {}]   ;;  %s728_s5 = inlined_call_operand.hbm [shape: f32[1,64], index: 5, kind: input, shape index: {}]   ;;  %s729_s6 = inlined_call_operand.hbm [shape: f32[1,64], index: 6, kind: input, shape index: {}]   ;;  %s730_s7 = inlined_call_operand.hbm [shape: bf16[16,64], index: 7, kind: output, shape index: {}]  }
   0x1   :  { %13 = vsyncpa [#allocation6], 0 }
   0x2   :  { %14 = vsyncpa [#allocation9], 0 }
   0x3   :  { %15 = vsyncpa [#allocation12], 0 }
   0x4   :  { %16 = vsyncpa [#allocation4], 0  ;;  %s541_s24 = smov [#allocation5]   ;;  %s542_s26 = smov [#allocation8]  }
   0x5   :  { %s34_s25 = sshll.u32 %s541_s24, 4  ;;  %s58_s27 = sshll.u32 %s542_s26, 4  ;;  %s35_s25 = int_to_ptr.vmem [resolvable:$true] %s34_s25  ;;  %s593_s27 = int_to_ptr.vmem [resolvable:$true] %s58_s27 }
   0x6   :  { %s355_s30 = scalar_lea.hbm %s724_s1, 128 }
   0x7   :  { %p356_p0 = scmp.ne.s32.totalorder %s724_s1, %s355_s30  ;;  %p359_p1 = scmp.lt.u32.totalorder %s355_s30, %s724_s1 }
   0x9   :  { %p361_p2 = pnand %p359_p1, %p356_p0 }
   0xb   :  { %364 = shalt.err (!%p361_p2)
}
   0xc   :  { %s365_s12 = scalar_lea.vmem %s35_s25, 128  ;;  %p370_p4 = scmp.lt.s32.totalorder %s35_s25, %s35_s25 }
   0xd   :  { %p366_p3 = scmp.ne.s32.totalorder %s35_s25, %s365_s12  ;;  %p371_p5 = scmp.lt.s32.totalorder %s365_s12, %s365_s12 }
   0xf   :  { %p372_p6 = por %p371_p5, %p370_p4 }
  0x11   :  { %p373_p7 = pnand %p372_p6, %p366_p3 }
  0x13   :  { %376 = shalt.err (!%p373_p7)
}
  0x14   :  { %s543_s13 = smov 64   ;;  %s544_s14 = smov 4  }
  0x15   :  { %40 = dma.hbm_to_vmem [thread:$0]  %s724_s1, 128, %s35_s25, [#allocation6], %s543_s13, %s543_s13, %s544_s14  }
  0x16   :  { %s377_s19 = scalar_lea.hbm %s726_s3, 512 }
  0x17   :  { %p378_p8 = scmp.ne.s32.totalorder %s726_s3, %s377_s19  ;;  %p381_p9 = scmp.lt.u32.totalorder %s377_s19, %s726_s3 }
  0x19   :  { %p383_p10 = pnand %p381_p9, %p378_p8 }
  0x1b   :  { %386 = shalt.err (!%p383_p10)
}
  0x1c   :  { %s387_s24 = scalar_lea.vmem %s593_s27, 512  ;;  %p392_p12 = scmp.lt.s32.totalorder %s593_s27, %s593_s27 }
  0x1d   :  { %p388_p11 = scmp.ne.s32.totalorder %s593_s27, %s387_s24  ;;  %p393_p13 = scmp.lt.s32.totalorder %s387_s24, %s387_s24 }
  0x1f   :  { %p394_p0 = por %p393_p13, %p392_p12 }
  0x21   :  { %p395_p1 = pnand %p394_p0, %p388_p11 }
  0x23   :  { %398 = shalt.err (!%p395_p1)
}
  0x24   :  { %64 = dma.hbm_to_vmem [thread:$0]  %s726_s3, 512, %s593_s27, [#allocation9], %s543_s13, %s543_s13, %s544_s14  }
  0x25   :  { %s545_s26 = smov [#allocation11]   ;;  %s546_s29 = smov [#allocation2]  }
  0x26   :  { %s81_s28 = sshll.u32 %s545_s26, 4  ;;  %s22_s30 = sshll.u32 %s546_s29, 4  ;;  %s82_s28 = int_to_ptr.vmem [resolvable:$true] %s81_s28  ;;  %s630_s30 = int_to_ptr.vmem [resolvable:$true] %s22_s30 }
  0x27   :  { %s399_s10 = scalar_lea.hbm %s728_s5, 16 }
  0x28   :  { %p400_p2 = scmp.ne.s32.totalorder %s728_s5, %s399_s10  ;;  %p403_p3 = scmp.lt.u32.totalorder %s399_s10, %s728_s5 }
  0x2a   :  { %p405_p4 = pnand %p403_p3, %p400_p2 }
  0x2c   :  { %408 = shalt.err (!%p405_p4)
}
  0x2d   :  { %s409_s3 = scalar_lea.vmem %s82_s28, 16  ;;  %s413_s27 = scalar_lea.vmem %s82_s28, 32 }
  0x2e   :  { %p410_p5 = scmp.ne.s32.totalorder %s82_s28, %s409_s3  ;;  %p414_p6 = scmp.lt.s32.totalorder %s82_s28, %s82_s28 }
  0x2f   :  { %p415_p7 = scmp.lt.s32.totalorder %s413_s27, %s409_s3 }
  0x31   :  { %p416_p8 = por %p415_p7, %p414_p6 }
  0x33   :  { %p417_p9 = pnand %p416_p8, %p410_p5 }
  0x35   :  { %420 = shalt.err (!%p417_p9)
}
  0x36   :  { %84 = dma.hbm_to_vmem [thread:$0]  %s728_s5, 16, %s82_s28, [#allocation12]  }
  0x37   :  { %s421_s21 = scalar_lea.hbm %s723_s0, 128 }
  0x38   :  { %p422_p10 = scmp.ne.s32.totalorder %s723_s0, %s421_s21  ;;  %p425_p11 = scmp.lt.u32.totalorder %s421_s21, %s723_s0 }
  0x3a   :  { %p427_p12 = pnand %p425_p11, %p422_p10 }
  0x3c   :  { %430 = shalt.err (!%p427_p12)
}
  0x3d   :  { %s431_s25 = scalar_lea.vmem %s630_s30, 128  ;;  %p436_p0 = scmp.lt.s32.totalorder %s630_s30, %s630_s30 }
  0x3e   :  { %p432_p13 = scmp.ne.s32.totalorder %s630_s30, %s431_s25  ;;  %p437_p1 = scmp.lt.s32.totalorder %s431_s25, %s431_s25 }
  0x40   :  { %p438_p2 = por %p437_p1, %p436_p0 }
  0x42   :  { %p439_p3 = pnand %p438_p2, %p432_p13 }
  0x44   :  { %442 = shalt.err (!%p439_p3)
}
  0x45   :  { %28 = dma.hbm_to_vmem [thread:$0]  %s723_s0, 128, %s630_s30, [#allocation3], %s543_s13, %s543_s13, %s544_s14  }
  0x46   :  { %s547_s28 = smov [#allocation7]   ;;  %s548_s8 = smov [#allocation10]  }
  0x47   :  { %s46_s29 = sshll.u32 %s547_s28, 4  ;;  %s71_s9 = sshll.u32 %s548_s8, 4  ;;  %s47_s29 = int_to_ptr.vmem [resolvable:$true] %s46_s29  ;;  %s72_s9 = int_to_ptr.vmem [resolvable:$true] %s71_s9 }
  0x48   :  { %s443_s12 = scalar_lea.hbm %s725_s2, 128 }
  0x49   :  { %p444_p4 = scmp.ne.s32.totalorder %s725_s2, %s443_s12  ;;  %p447_p5 = scmp.lt.u32.totalorder %s443_s12, %s725_s2 }
  0x4b   :  { %p449_p6 = pnand %p447_p5, %p444_p4 }
  0x4d   :  { %452 = shalt.err (!%p449_p6)
}
  0x4e   :  { %s453_s0 = scalar_lea.vmem %s47_s29, 128  ;;  %p458_p8 = scmp.lt.s32.totalorder %s47_s29, %s47_s29 }
  0x4f   :  { %p454_p7 = scmp.ne.s32.totalorder %s47_s29, %s453_s0  ;;  %p459_p9 = scmp.lt.s32.totalorder %s453_s0, %s453_s0 }
  0x51   :  { %p460_p10 = por %p459_p9, %p458_p8 }
  0x53   :  { %p461_p11 = pnand %p460_p10, %p454_p7 }
  0x55   :  { %464 = shalt.err (!%p461_p11)
}
  0x56   :  { %52 = dma.hbm_to_vmem [thread:$0]  %s725_s2, 128, %s47_s29, [#allocation6], %s543_s13, %s543_s13, %s544_s14  }
  0x57   :  { %s465_s20 = scalar_lea.hbm %s727_s4, 16 }
  0x58   :  { %p466_p12 = scmp.ne.s32.totalorder %s727_s4, %s465_s20  ;;  %p469_p13 = scmp.lt.u32.totalorder %s465_s20, %s727_s4 }
  0x5a   :  { %p471_p0 = pnand %p469_p13, %p466_p12 }
  0x5c   :  { %474 = shalt.err (!%p471_p0)
}
  0x5d   :  { %s475_s1 = scalar_lea.vmem %s72_s9, 16  ;;  %s479_s25 = scalar_lea.vmem %s72_s9, 32 }
  0x5e   :  { %p476_p1 = scmp.ne.s32.totalorder %s72_s9, %s475_s1  ;;  %p480_p2 = scmp.lt.s32.totalorder %s72_s9, %s72_s9 }
  0x5f   :  { %p481_p3 = scmp.lt.s32.totalorder %s479_s25, %s475_s1 }
  0x61   :  { %p482_p4 = por %p481_p3, %p480_p2 }
  0x63   :  { %p483_p5 = pnand %p482_p4, %p476_p1 }
  0x65   :  { %486 = shalt.err (!%p483_p5)
}
  0x66   :  { %74 = dma.hbm_to_vmem [thread:$0]  %s727_s4, 16, %s72_s9, [#allocation9]  }
  0x67   :  { %s549_s26 = smov [#allocation13]   ;;  %s487_s10 = scalar_lea.hbm %s729_s6, 16 }
  0x68   :  { %s91_s28 = sshll.u32 %s549_s26, 4  ;;  %p488_p6 = scmp.ne.s32.totalorder %s729_s6, %s487_s10  ;;  %s92_s28 = int_to_ptr.vmem [resolvable:$true] %s91_s28 }
  0x69   :  { %p491_p7 = scmp.lt.u32.totalorder %s487_s10, %s729_s6 }
  0x6b   :  { %p493_p8 = pnand %p491_p7, %p488_p6 }
  0x6d   :  { %496 = shalt.err (!%p493_p8)
}
  0x6e   :  { %s497_s3 = scalar_lea.vmem %s92_s28, 16  ;;  %s501_s4 = scalar_lea.vmem %s92_s28, 32 }
  0x6f   :  { %p498_p9 = scmp.ne.s32.totalorder %s92_s28, %s497_s3  ;;  %p502_p10 = scmp.lt.s32.totalorder %s92_s28, %s92_s28 }
  0x70   :  { %p503_p11 = scmp.lt.s32.totalorder %s501_s4, %s497_s3 }
  0x72   :  { %p504_p12 = por %p503_p11, %p502_p10 }
  0x74   :  { %p505_p13 = pnand %p504_p12, %p498_p9 }
  0x76   :  { %508 = shalt.err (!%p505_p13)
}
  0x77   :  { %94 = dma.hbm_to_vmem [thread:$0]  %s729_s6, 16, %s92_s28, [#allocation12]  }
  0x78   :  { %531 = dma.done.wait [#allocation3], 128  }
  0x79   :  { %532 = vsyncadd [#allocation3], 4294967168 }
  0x7a   :  { %533 = dma.done.wait [#allocation6], 256  }
  0x7b   :  { %534 = vsyncadd [#allocation6], 4294967040 }
  0x7c   :  { %535 = dma.done.wait [#allocation9], 528  }
  0x7d   :  { %536 = vsyncadd [#allocation9], 4294966768 }
  0x7e   :  { %537 = dma.done.wait [#allocation12], 32  }
  0x7f   :  { %538 = vsyncadd [#allocation12], 4294967264  ;;  %v550_v0 = vmov 0.0   ;;  %vm551_vm0 = vmmov 0   ;;  %v347_v1 = vld [vmem:[#allocation8] sm:$0xff]   ;;  %v348_v2 = vld [vmem:[#allocation8 + $0x8] sm:$0xff]  }
  0x80   :  { %323 = vmatprep.subr.bf16.mxu0 %v550_v0  ;;  %331 = vmatprep.mubr.msk.bf16.mxu0 %vm551_vm0, %v550_v0  ;;  %v307_v3 = vld [vmem:[#allocation2] sm:$0xff]   ;;  %v311_v4 = vld [vmem:[#allocation5] sm:$0xff]   ;;  %v350_v12 = vld [vmem:[#allocation8 + $0x18] sm:$0xff]   ;;  %vm167_vm1 = vcmask 523264   ;;  %vm271_vm2 = vcmask 519168   ;;  %s552_s6 = smov [#allocation14]  }
  0x81   :  { %324 = vmatpush3.bf16.msra.mxu0 %v347_v1  ;;  %v308_v5 = vunpack.c.l.bf16 %v307_v3  ;;  %v309_v6 = vunpack.c.h.bf16 %v307_v3  ;;  %v312_v7 = vunpack.c.l.bf16 %v311_v4  ;;  %v313_v8 = vunpack.c.h.bf16 %v311_v4  ;;  %v349_v9 = vld [vmem:[#allocation8 + $0x10] sm:$0xff]   ;;  %v315_v14 = vld [vmem:[#allocation7] sm:$0xff]   ;;  %v294_v15 = vld [vmem:[#allocation10] ss:$0 sm:$0xff]  ;;  %s279_s0 = sshll.u32 %s552_s6, 4  ;;  %s280_s0 = int_to_ptr.vmem [resolvable:$true] %s279_s0 }
  0x82   :  { %325 = vmatprep.subr.bf16.mxu0 %v550_v0  ;;  %v316_v16 = vunpack.c.l.bf16 %v315_v14  ;;  %v317_v20 = vunpack.c.h.bf16 %v315_v14  ;;  %v300_v45 = vld [vmem:[#allocation11] ss:$0 sm:$0xff]  ;;  %v301_v47 = vld [vmem:[#allocation13] ss:$0 sm:$0xff]  ;;  %s509_s30 = scalar_lea.vmem %s280_s0, 128  ;;  %p514_p1 = scmp.lt.s32.totalorder %s280_s0, %s280_s0 }
  0x83   :  { %v125_v10 = vmul.f32 %v312_v7, %v308_v5  ;;  %v126_v11 = vmul.f32 %v313_v8, %v309_v6  ;;  %p510_p0 = scmp.ne.s32.totalorder %s280_s0, %s509_s30  ;;  %p515_p2 = scmp.lt.s32.totalorder %s509_s30, %s509_s30 }
  0x85   :  { %326 = vmatpush3.bf16.msra.mxu0 %v348_v2  ;;  %v127_v13 = vpack.c.bf16 %v126_v11, %v125_v10  ;;  %p516_p3 = por %p515_p2, %p514_p1 }
  0x86   :  { %327 = vmatprep.subr.bf16.mxu0 %v550_v0 }
  0x87   :  { %p517_p4 = pnand %p516_p3, %p510_p0 }
  0x89   :  { %328 = vmatpush3.bf16.msra.mxu0 %v349_v9 }
  0x8a   :  { %329 = vmatprep.subr.bf16.mxu0 %v550_v0 }
  0x8d   :  { %330 = vmatpush3.bf16.msra.mxu0 %v350_v12 }
  0x90   :  { %332 = vmatmul.mubr.msk.bf16.vlgmr.msra.gmra.mrb[0].mxu0 %vm167_vm1, %v127_v13 }
 0x163   :  { %v205_v17 = vpop.f32.mrb[0].mxu0 }
 0x164   :  { %v206_v18 = vadd.f32 %v294_v15, %v205_v17  ;;  %v333_v19 = vpop.f32.mrb[1].mxu0 }
 0x165   :  { %v208_v21 = vpop.f32.mrb[2].mxu0 }
 0x166   :  { %v209_v22 = vadd.f32 %v294_v15, %v208_v21  ;;  %v334_v23 = vpop.f32.mrb[3].mxu0  ;;  %v216_v24 = vadd.f32 %v316_v16, %v206_v18 }
 0x168   :  { %v220_v25 = vsel %vm167_vm1, %v216_v24, 0.0  ;;  %v217_v26 = vadd.f32 %v317_v20, %v209_v22 }
 0x169   :  { %221 = vadd.xlane.f32.xlu0 %v220_v25 }
 0x16a   :  { %v223_v27 = vsel %vm167_vm1, %v217_v26, 0.0 }
 0x16d   :  { %224 = vadd.xlane.f32.xlu0 %v223_v27 }
 0x1f6   :  { %v222_v28 = vpop.xlane.xlu0 %221 }
 0x1f7   :  { %v227_v29 = vmul.f32 0.015625, %v222_v28 }
 0x1f9   :  { %v229_v30 = vsub.f32 %v216_v24, %v227_v29 }
 0x1fa   :  { %v225_v31 = vpop.xlane.xlu0 %224 }
 0x1fb   :  { %v228_v32 = vmul.f32 0.015625, %v225_v31  ;;  %v231_v33 = vmul.f32 %v229_v30, %v229_v30 }
 0x1fd   :  { %v230_v34 = vsub.f32 %v217_v26, %v228_v32  ;;  %v233_v35 = vsel %vm167_vm1, %v231_v33, 0.0 }
 0x1fe   :  { %234 = vadd.xlane.f32.xlu1 %v233_v35 }
 0x1ff   :  { %v232_v36 = vmul.f32 %v230_v34, %v230_v34 }
 0x201   :  { %v236_v37 = vsel %vm167_vm1, %v232_v36, 0.0 }
 0x202   :  { %237 = vadd.xlane.f32.xlu1 %v236_v37 }
 0x28b   :  { %v235_v38 = vpop.xlane.xlu1 %234 }
 0x28c   :  { %v239_v39 = vmul.f32 0.015625, %v235_v38 }
 0x28e   :  { %v241_v40 = vadd.f32 1e-12, %v239_v39 }
 0x28f   :  { %v238_v41 = vpop.xlane.xlu1 %237 }
 0x290   :  { %351 = vrsqrt.f32 %v241_v40  ;;  %v240_v42 = vmul.f32 0.015625, %v238_v41 }
 0x292   :  { %v242_v43 = vadd.f32 1e-12, %v240_v42 }
 0x294   :  { %353 = vrsqrt.f32 %v242_v43 }
 0x29a   :  { %v352_v44 = vpop.eup %351 }
 0x29b   :  { %v245_v46 = vmul.f32 %v352_v44, %v229_v30 }
 0x29d   :  { %v253_v48 = vmul.f32 %v300_v45, %v245_v46 }
 0x29e   :  { %v354_v49 = vpop.eup %353 }
 0x29f   :  { %v246_v50 = vmul.f32 %v354_v49, %v230_v34  ;;  %v261_v51 = vadd.f32 %v301_v47, %v253_v48 }
 0x2a1   :  { %v254_v52 = vmul.f32 %v300_v45, %v246_v50  ;;  %v304_v53 = vpack.c.bf16 %v261_v51, %v261_v51 }
 0x2a3   :  { %v262_v54 = vadd.f32 %v301_v47, %v254_v52  ;;  %272 = vst.msk [vmem:[#allocation14] sm:$0xf] %vm271_vm2, %v304_v53 }
 0x2a5   :  { %v305_v55 = vpack.c.bf16 %v262_v54, %v262_v54 }
 0x2a7   :  { %273 = vst.msk [vmem:[#allocation14 + $0x4] sm:$0xf] %vm271_vm2, %v305_v55 }
 0x2a8   :  { %520 = shalt.err (!%p517_p4)
}
 0x2a9   :  { %s521_s19 = scalar_lea.hbm %s730_s7, 128 }
 0x2aa   :  { %p522_p5 = scmp.ne.s32.totalorder %s730_s7, %s521_s19  ;;  %p525_p6 = scmp.lt.u32.totalorder %s521_s19, %s730_s7 }
 0x2ac   :  { %p527_p7 = pnand %p525_p6, %p522_p5 }
 0x2ae   :  { %530 = shalt.err (!%p527_p7)
}
 0x2af   :  { %285 = dma.vmem_to_hbm [thread:$0]  %s280_s0, 128, %s730_s7, [#allocation4], %s543_s13, %s543_s13, %s544_s14  }
 0x2b0   :  { %539 = dma.done.wait [#allocation4], 128  }
 0x2b1   :  { %540 = vsyncadd [#allocation4], 4294967168 }
 0x2b2   :  { %289 = vsyncpa [#allocation3], 1 }
 0x2b3   :  { %290 = vsyncpa [#allocation6], 1 }
 0x2b4   :  { %291 = vsyncpa [#allocation9], 1 }
 0x2b5   :  { %292 = vsyncpa [#allocation12], 1 }
 0x2b6   :  { %293 = vsyncpa [#allocation4], 1 }

// kernel: m2bert_reranker_forward.10
= control target key start
LH: loop header
LB: loop body
LE: loop exit
PB: predicated region body
PF: predicated region fallthrough
CT: control target
= control target key end

     0   :  { %12 = vsyncpa [#allocation3], 0  ;;  %s889_s0 = inlined_call_operand.hbm [shape: bf16[16,64], index: 0, kind: input, shape index: {}]   ;;  %s890_s1 = inlined_call_operand.hbm [shape: bf16[64,128], index: 1, kind: input, shape index: {}]   ;;  %s891_s2 = inlined_call_operand.hbm [shape: f32[1,128], index: 2, kind: input, shape index: {}]   ;;  %s892_s3 = inlined_call_operand.hbm [shape: bf16[128,64], index: 3, kind: input, shape index: {}]   ;;  %s893_s4 = inlined_call_operand.hbm [shape: f32[1,64], index: 4, kind: input, shape index: {}]   ;;  %s894_s5 = inlined_call_operand.hbm [shape: f32[1,64], index: 5, kind: input, shape index: {}]   ;;  %s895_s6 = inlined_call_operand.hbm [shape: f32[1,64], index: 6, kind: input, shape index: {}]   ;;  %s896_s7 = inlined_call_operand.hbm [shape: bf16[16,64], index: 7, kind: output, shape index: {}]  }
   0x1   :  { %13 = vsyncpa [#allocation6], 0 }
   0x2   :  { %14 = vsyncpa [#allocation9], 0 }
   0x3   :  { %15 = vsyncpa [#allocation12], 0 }
   0x4   :  { %16 = vsyncpa [#allocation4], 0  ;;  %s705_s24 = smov [#allocation5]   ;;  %s706_s26 = smov [#allocation8]  }
   0x5   :  { %s34_s25 = sshll.u32 %s705_s24, 4  ;;  %s56_s27 = sshll.u32 %s706_s26, 4  ;;  %s35_s25 = int_to_ptr.vmem [resolvable:$true] %s34_s25  ;;  %s757_s27 = int_to_ptr.vmem [resolvable:$true] %s56_s27 }
   0x6   :  { %s519_s30 = scalar_lea.hbm %s890_s1, 512 }
   0x7   :  { %p520_p0 = scmp.ne.s32.totalorder %s890_s1, %s519_s30  ;;  %p523_p1 = scmp.lt.u32.totalorder %s519_s30, %s890_s1 }
   0x9   :  { %p525_p2 = pnand %p523_p1, %p520_p0 }
   0xb   :  { %528 = shalt.err (!%p525_p2)
}
   0xc   :  { %s529_s12 = scalar_lea.vmem %s35_s25, 512  ;;  %p534_p4 = scmp.lt.s32.totalorder %s35_s25, %s35_s25 }
   0xd   :  { %p530_p3 = scmp.ne.s32.totalorder %s35_s25, %s529_s12  ;;  %p535_p5 = scmp.lt.s32.totalorder %s529_s12, %s529_s12 }
   0xf   :  { %p536_p6 = por %p535_p5, %p534_p4 }
  0x11   :  { %p537_p7 = pnand %p536_p6, %p530_p3 }
  0x13   :  { %540 = shalt.err (!%p537_p7)
}
  0x14   :  { %s707_s13 = smov 64   ;;  %s708_s14 = smov 4  }
  0x15   :  { %40 = dma.hbm_to_vmem [thread:$0]  %s890_s1, 512, %s35_s25, [#allocation6], %s707_s13, %s707_s13, %s708_s14  }
  0x16   :  { %s541_s19 = scalar_lea.hbm %s892_s3, 1024 }
  0x17   :  { %p542_p8 = scmp.ne.s32.totalorder %s892_s3, %s541_s19  ;;  %p545_p9 = scmp.lt.u32.totalorder %s541_s19, %s892_s3 }
  0x19   :  { %p547_p10 = pnand %p545_p9, %p542_p8 }
  0x1b   :  { %550 = shalt.err (!%p547_p10)
}
  0x1c   :  { %s551_s24 = scalar_lea.vmem %s757_s27, 1024  ;;  %p556_p12 = scmp.lt.s32.totalorder %s757_s27, %s757_s27 }
  0x1d   :  { %p552_p11 = scmp.ne.s32.totalorder %s757_s27, %s551_s24  ;;  %p557_p13 = scmp.lt.s32.totalorder %s551_s24, %s551_s24 }
  0x1f   :  { %p558_p0 = por %p557_p13, %p556_p12 }
  0x21   :  { %p559_p1 = pnand %p558_p0, %p552_p11 }
  0x23   :  { %562 = shalt.err (!%p559_p1)
}
  0x24   :  { %62 = dma.hbm_to_vmem [thread:$0]  %s892_s3, 1024, %s757_s27, [#allocation9], %s707_s13, %s707_s13, %s708_s14  }
  0x25   :  { %s709_s26 = smov [#allocation11]   ;;  %s710_s29 = smov [#allocation2]  }
  0x26   :  { %s79_s28 = sshll.u32 %s709_s26, 4  ;;  %s22_s30 = sshll.u32 %s710_s29, 4  ;;  %s80_s28 = int_to_ptr.vmem [resolvable:$true] %s79_s28  ;;  %s794_s30 = int_to_ptr.vmem [resolvable:$true] %s22_s30 }
  0x27   :  { %s563_s10 = scalar_lea.hbm %s894_s5, 16 }
  0x28   :  { %p564_p2 = scmp.ne.s32.totalorder %s894_s5, %s563_s10  ;;  %p567_p3 = scmp.lt.u32.totalorder %s563_s10, %s894_s5 }
  0x2a   :  { %p569_p4 = pnand %p567_p3, %p564_p2 }
  0x2c   :  { %572 = shalt.err (!%p569_p4)
}
  0x2d   :  { %s573_s3 = scalar_lea.vmem %s80_s28, 16  ;;  %s577_s27 = scalar_lea.vmem %s80_s28, 32 }
  0x2e   :  { %p574_p5 = scmp.ne.s32.totalorder %s80_s28, %s573_s3  ;;  %p578_p6 = scmp.lt.s32.totalorder %s80_s28, %s80_s28 }
  0x2f   :  { %p579_p7 = scmp.lt.s32.totalorder %s577_s27, %s573_s3 }
  0x31   :  { %p580_p8 = por %p579_p7, %p578_p6 }
  0x33   :  { %p581_p9 = pnand %p580_p8, %p574_p5 }
  0x35   :  { %584 = shalt.err (!%p581_p9)
}
  0x36   :  { %82 = dma.hbm_to_vmem [thread:$0]  %s894_s5, 16, %s80_s28, [#allocation12]  }
  0x37   :  { %s585_s21 = scalar_lea.hbm %s889_s0, 128 }
  0x38   :  { %p586_p10 = scmp.ne.s32.totalorder %s889_s0, %s585_s21  ;;  %p589_p11 = scmp.lt.u32.totalorder %s585_s21, %s889_s0 }
  0x3a   :  { %p591_p12 = pnand %p589_p11, %p586_p10 }
  0x3c   :  { %594 = shalt.err (!%p591_p12)
}
  0x3d   :  { %s595_s25 = scalar_lea.vmem %s794_s30, 128  ;;  %p600_p0 = scmp.lt.s32.totalorder %s794_s30, %s794_s30 }
  0x3e   :  { %p596_p13 = scmp.ne.s32.totalorder %s794_s30, %s595_s25  ;;  %p601_p1 = scmp.lt.s32.totalorder %s595_s25, %s595_s25 }
  0x40   :  { %p602_p2 = por %p601_p1, %p600_p0 }
  0x42   :  { %p603_p3 = pnand %p602_p2, %p596_p13 }
  0x44   :  { %606 = shalt.err (!%p603_p3)
}
  0x45   :  { %28 = dma.hbm_to_vmem [thread:$0]  %s889_s0, 128, %s794_s30, [#allocation3], %s707_s13, %s707_s13, %s708_s14  }
  0x46   :  { %s711_s28 = smov [#allocation7]   ;;  %s712_s8 = smov [#allocation10]  }
  0x47   :  { %s47_s29 = sshll.u32 %s711_s28, 4  ;;  %s69_s9 = sshll.u32 %s712_s8, 4  ;;  %s48_s29 = int_to_ptr.vmem [resolvable:$true] %s47_s29  ;;  %s70_s9 = int_to_ptr.vmem [resolvable:$true] %s69_s9 }
  0x48   :  { %s607_s12 = scalar_lea.hbm %s891_s2, 16 }
  0x49   :  { %p608_p4 = scmp.ne.s32.totalorder %s891_s2, %s607_s12  ;;  %p611_p5 = scmp.lt.u32.totalorder %s607_s12, %s891_s2 }
  0x4b   :  { %p613_p6 = pnand %p611_p5, %p608_p4 }
  0x4d   :  { %616 = shalt.err (!%p613_p6)
}
  0x4e   :  { %s617_s0 = scalar_lea.vmem %s48_s29, 16  ;;  %s621_s30 = scalar_lea.vmem %s48_s29, 32 }
  0x4f   :  { %p618_p7 = scmp.ne.s32.totalorder %s48_s29, %s617_s0  ;;  %p622_p8 = scmp.lt.s32.totalorder %s48_s29, %s48_s29 }
  0x50   :  { %p623_p9 = scmp.lt.s32.totalorder %s621_s30, %s617_s0 }
  0x52   :  { %p624_p10 = por %p623_p9, %p622_p8 }
  0x54   :  { %p625_p11 = pnand %p624_p10, %p618_p7 }
  0x56   :  { %628 = shalt.err (!%p625_p11)
}
  0x57   :  { %50 = dma.hbm_to_vmem [thread:$0]  %s891_s2, 16, %s48_s29, [#allocation6]  }
  0x58   :  { %s629_s21 = scalar_lea.hbm %s893_s4, 16 }
  0x59   :  { %p630_p12 = scmp.ne.s32.totalorder %s893_s4, %s629_s21  ;;  %p633_p13 = scmp.lt.u32.totalorder %s629_s21, %s893_s4 }
  0x5b   :  { %p635_p0 = pnand %p633_p13, %p630_p12 }
  0x5d   :  { %638 = shalt.err (!%p635_p0)
}
  0x5e   :  { %s639_s25 = scalar_lea.vmem %s70_s9, 16  ;;  %s643_s5 = scalar_lea.vmem %s70_s9, 32 }
  0x5f   :  { %p640_p1 = scmp.ne.s32.totalorder %s70_s9, %s639_s25  ;;  %p644_p2 = scmp.lt.s32.totalorder %s70_s9, %s70_s9 }
  0x60   :  { %p645_p3 = scmp.lt.s32.totalorder %s643_s5, %s639_s25 }
  0x62   :  { %p646_p4 = por %p645_p3, %p644_p2 }
  0x64   :  { %p647_p5 = pnand %p646_p4, %p640_p1 }
  0x66   :  { %650 = shalt.err (!%p647_p5)
}
  0x67   :  { %72 = dma.hbm_to_vmem [thread:$0]  %s893_s4, 16, %s70_s9, [#allocation9]  }
  0x68   :  { %s713_s28 = smov [#allocation13]   ;;  %s651_s11 = scalar_lea.hbm %s895_s6, 16 }
  0x69   :  { %s89_s29 = sshll.u32 %s713_s28, 4  ;;  %p652_p6 = scmp.ne.s32.totalorder %s895_s6, %s651_s11  ;;  %s90_s29 = int_to_ptr.vmem [resolvable:$true] %s89_s29 }
  0x6a   :  { %p655_p7 = scmp.lt.u32.totalorder %s651_s11, %s895_s6 }
  0x6c   :  { %p657_p8 = pnand %p655_p7, %p652_p6 }
  0x6e   :  { %660 = shalt.err (!%p657_p8)
}
  0x6f   :  { %s661_s27 = scalar_lea.vmem %s90_s29, 16  ;;  %s665_s4 = scalar_lea.vmem %s90_s29, 32 }
  0x70   :  { %p662_p9 = scmp.ne.s32.totalorder %s90_s29, %s661_s27  ;;  %p666_p10 = scmp.lt.s32.totalorder %s90_s29, %s90_s29 }
  0x71   :  { %p667_p11 = scmp.lt.s32.totalorder %s665_s4, %s661_s27 }
  0x73   :  { %p668_p12 = por %p667_p11, %p666_p10 }
  0x75   :  { %p669_p13 = pnand %p668_p12, %p662_p9 }
  0x77   :  { %672 = shalt.err (!%p669_p13)
}
  0x78   :  { %92 = dma.hbm_to_vmem [thread:$0]  %s895_s6, 16, %s90_s29, [#allocation12]  }
  0x79   :  { %695 = dma.done.wait [#allocation3], 128  }
  0x7a   :  { %696 = vsyncadd [#allocation3], 4294967168 }
  0x7b   :  { %697 = dma.done.wait [#allocation6], 528  }
  0x7c   :  { %698 = vsyncadd [#allocation6], 4294966768 }
  0x7d   :  { %699 = dma.done.wait [#allocation9], 1040  }
  0x7e   :  { %700 = vsyncadd [#allocation9], 4294966256 }
  0x7f   :  { %701 = dma.done.wait [#allocation12], 32  }
  0x80   :  { %702 = vsyncadd [#allocation12], 4294967264  ;;  %v714_v0 = vmov 0.0   ;;  %vm715_vm0 = vmmov 0   ;;  %v497_v1 = vld [vmem:[#allocation5] sm:$0xff]   ;;  %v498_v2 = vld [vmem:[#allocation5 + $0x8] sm:$0xff]  }
  0x81   :  { %453 = vmatprep.subr.bf16.mxu0 %v714_v0  ;;  %461 = vmatprep.mubr.msk.bf16.mxu0 %vm715_vm0, %v714_v0  ;;  %v499_v3 = vld [vmem:[#allocation5 + $0x10] sm:$0xff]   ;;  %v500_v4 = vld [vmem:[#allocation5 + $0x18] sm:$0xff]   ;;  %vm161_vm1 = vcmask 523264   ;;  %v502_v6 = vld [vmem:[#allocation8] sm:$0xff]   ;;  %vm394_vm2 = vcmask 519168   ;;  %s716_s6 = smov [#allocation14]  }
  0x82   :  { %465 = vmatprep.subr.bf16.mxu1 %v714_v0  ;;  %481 = vmatprep.mubr.msk.bf16.mxu1 %vm715_vm0, %v714_v0  ;;  %v864_v5 = vld [vmem:[#allocation2] sm:$0xff]   ;;  %v503_v7 = vld [vmem:[#allocation8 + $0x8] sm:$0xff]   ;;  %v506_v10 = vld [vmem:[#allocation8 + $0x20] sm:$0xff]   ;;  %s402_s30 = sshll.u32 %s716_s6, 4  ;;  %s403_s30 = int_to_ptr.vmem [resolvable:$true] %s402_s30 }
  0x83   :  { %454 = vmatpush3.bf16.msra.mxu0 %v497_v1  ;;  %466 = vmatpush3.bf16.msra.mxu1 %v502_v6  ;;  %v504_v8 = vld [vmem:[#allocation8 + $0x10] sm:$0xff]   ;;  %v505_v9 = vld [vmem:[#allocation8 + $0x18] sm:$0xff]   ;;  %v507_v11 = vld [vmem:[#allocation8 + $0x28] sm:$0xff]   ;;  %v337_v41 = vunpack.c.l.bf16 %v864_v5  ;;  %v338_v45 = vunpack.c.h.bf16 %v864_v5  ;;  %s673_s17 = scalar_lea.vmem %s403_s30, 128  ;;  %p678_p1 = scmp.lt.s32.totalorder %s403_s30, %s403_s30 }
  0x84   :  { %455 = vmatprep.subr.bf16.mxu0 %v714_v0  ;;  %467 = vmatprep.subr.bf16.mxu1 %v714_v0  ;;  %v508_v12 = vld [vmem:[#allocation8 + $0x30] sm:$0xff]   ;;  %v509_v13 = vld [vmem:[#allocation8 + $0x38] sm:$0xff]   ;;  %v424_v40 = vld [vmem:[#allocation10] ss:$0 sm:$0xff]  ;;  %p674_p0 = scmp.ne.s32.totalorder %s403_s30, %s673_s17  ;;  %p679_p2 = scmp.lt.s32.totalorder %s673_s17, %s673_s17 }
  0x85   :  { %v417_v14 = vld [vmem:[#allocation7] ss:$0 sm:$0xff]  ;;  %v433_v6 = vld [vmem:[#allocation11] ss:$0 sm:$0xff] }
  0x86   :  { %p680_p3 = por %p679_p2, %p678_p1 }
  0x87   :  { %456 = vmatpush3.bf16.msra.mxu0 %v498_v2  ;;  %468 = vmatpush3.bf16.msra.mxu1 %v503_v7 }
  0x88   :  { %457 = vmatprep.subr.bf16.mxu0 %v714_v0  ;;  %469 = vmatprep.subr.bf16.mxu1 %v714_v0  ;;  %p681_p4 = pnand %p680_p3, %p674_p0 }
  0x8b   :  { %458 = vmatpush3.bf16.msra.mxu0 %v499_v3  ;;  %470 = vmatpush3.bf16.msra.mxu1 %v504_v8  ;;  %v434_v8 = vld [vmem:[#allocation13] ss:$0 sm:$0xff] }
  0x8c   :  { %459 = vmatprep.subr.bf16.mxu0 %v714_v0  ;;  %471 = vmatprep.subr.bf16.mxu1 %v714_v0 }
  0x8f   :  { %460 = vmatpush3.bf16.msra.mxu0 %v500_v4  ;;  %472 = vmatpush3.bf16.msra.mxu1 %v505_v9 }
  0x90   :  { %473 = vmatprep.subr.bf16.mxu1 %v714_v0 }
  0x92   :  { %462 = vmatmul.mubr.msk.bf16.vlgmr.msra.gmra.mrb[0].mxu0 %vm161_vm1, %v864_v5 }
  0x93   :  { %474 = vmatpush3.bf16.msra.mxu1 %v506_v10 }
  0x94   :  { %475 = vmatprep.subr.bf16.mxu1 %v714_v0 }
  0x97   :  { %476 = vmatpush3.bf16.msra.mxu1 %v507_v11 }
  0x98   :  { %477 = vmatprep.subr.bf16.mxu1 %v714_v0 }
  0x9b   :  { %478 = vmatpush3.bf16.msra.mxu1 %v508_v12 }
  0x9c   :  { %479 = vmatprep.subr.bf16.mxu1 %v714_v0 }
  0x9f   :  { %480 = vmatpush3.bf16.msra.mxu1 %v509_v13 }
 0x165   :  { %v199_v15 = vpop.f32.mrb[0].mxu0 }
 0x166   :  { %v200_v16 = vadd.f32 %v417_v14, %v199_v15  ;;  %v463_v17 = vpop.f32.mrb[1].mxu0 }
 0x167   :  { %v202_v18 = vpop.f32.mrb[2].mxu0 }
 0x168   :  { %v206_v19 = vmul.f32 %v200_v16, %v200_v16  ;;  %v203_v20 = vadd.f32 %v417_v14, %v202_v18  ;;  %v464_v21 = vpop.f32.mrb[3].mxu0 }
 0x16a   :  { %v208_v22 = vmul.f32 %v206_v19, %v200_v16  ;;  %v207_v23 = vmul.f32 %v203_v20, %v203_v20 }
 0x16c   :  { %v210_v24 = vmul.f32 0.044715, %v208_v22  ;;  %v209_v25 = vmul.f32 %v207_v23, %v203_v20 }
 0x16e   :  { %v212_v26 = vadd.f32 %v210_v24, %v200_v16  ;;  %v211_v27 = vmul.f32 0.044715, %v209_v25 }
 0x170   :  { %v214_v28 = vmul.f32 0.7978846, %v212_v26  ;;  %v213_v29 = vadd.f32 %v211_v27, %v203_v20 }
 0x172   :  { %511 = vtanh.f32 %v214_v28  ;;  %v215_v30 = vmul.f32 0.7978846, %v213_v29 }
 0x174   :  { %513 = vtanh.f32 %v215_v30 }
 0x17c   :  { %v512_v31 = vpop.eup %511 }
 0x17d   :  { %v218_v32 = vadd.f32 1.0, %v512_v31 }
 0x17e   :  { %v514_v33 = vpop.eup %513 }
 0x17f   :  { %v219_v34 = vadd.f32 1.0, %v514_v33  ;;  %v220_v35 = vmul.f32 0.5, %v218_v32 }
 0x181   :  { %v221_v36 = vmul.f32 0.5, %v219_v34  ;;  %v222_v37 = vmul.f32 %v220_v35, %v200_v16 }
 0x183   :  { %v223_v38 = vmul.f32 %v221_v36, %v203_v20 }
 0x185   :  { %v224_v39 = vpack.c.bf16 %v223_v38, %v222_v37 }
 0x187   :  { %482 = vmatmul.mubr.bf16.vlgmr.msra.gmra.mrb[0].mxu1 %v224_v39 }
 0x25a   :  { %v330_v42 = vpop.f32.mrb[0].mxu1 }
 0x25b   :  { %v331_v43 = vadd.f32 %v424_v40, %v330_v42  ;;  %v483_v44 = vpop.f32.mrb[1].mxu1 }
 0x25c   :  { %v333_v46 = vpop.f32.mrb[2].mxu1 }
 0x25d   :  { %v334_v47 = vadd.f32 %v424_v40, %v333_v46  ;;  %v484_v48 = vpop.f32.mrb[3].mxu1  ;;  %v339_v49 = vadd.f32 %v337_v41, %v331_v43 }
 0x25f   :  { %v343_v50 = vsel %vm161_vm1, %v339_v49, 0.0  ;;  %v340_v51 = vadd.f32 %v338_v45, %v334_v47 }
 0x260   :  { %344 = vadd.xlane.f32.xlu0 %v343_v50 }
 0x261   :  { %v346_v52 = vsel %vm161_vm1, %v340_v51, 0.0 }
 0x264   :  { %347 = vadd.xlane.f32.xlu0 %v346_v52 }
 0x2ed   :  { %v345_v53 = vpop.xlane.xlu0 %344 }
 0x2ee   :  { %v350_v54 = vmul.f32 0.015625, %v345_v53 }
 0x2f0   :  { %v352_v55 = vsub.f32 %v339_v49, %v350_v54 }
 0x2f1   :  { %v348_v56 = vpop.xlane.xlu0 %347 }
 0x2f2   :  { %v351_v57 = vmul.f32 0.015625, %v348_v56  ;;  %v354_v58 = vmul.f32 %v352_v55, %v352_v55 }
 0x2f4   :  { %v353_v59 = vsub.f32 %v340_v51, %v351_v57  ;;  %v356_v60 = vsel %vm161_vm1, %v354_v58, 0.0 }
 0x2f5   :  { %357 = vadd.xlane.f32.xlu1 %v356_v60 }
 0x2f6   :  { %v355_v61 = vmul.f32 %v353_v59, %v353_v59 }
 0x2f8   :  { %v359_v62 = vsel %vm161_vm1, %v355_v61, 0.0 }
 0x2f9   :  { %360 = vadd.xlane.f32.xlu1 %v359_v62 }
 0x382   :  { %v358_v63 = vpop.xlane.xlu1 %357 }
 0x383   :  { %v362_v0 = vmul.f32 0.015625, %v358_v63 }
 0x385   :  { %v364_v1 = vadd.f32 1e-12, %v362_v0 }
 0x386   :  { %v361_v2 = vpop.xlane.xlu1 %360 }
 0x387   :  { %515 = vrsqrt.f32 %v364_v1  ;;  %v363_v3 = vmul.f32 0.015625, %v361_v2 }
 0x389   :  { %v365_v4 = vadd.f32 1e-12, %v363_v3 }
 0x38b   :  { %517 = vrsqrt.f32 %v365_v4 }
 0x391   :  { %v516_v5 = vpop.eup %515 }
 0x392   :  { %v368_v7 = vmul.f32 %v516_v5, %v352_v55 }
 0x394   :  { %v376_v9 = vmul.f32 %v433_v6, %v368_v7 }
 0x395   :  { %v518_v10 = vpop.eup %517 }
 0x396   :  { %v369_v11 = vmul.f32 %v518_v10, %v353_v59  ;;  %v384_v12 = vadd.f32 %v434_v8, %v376_v9 }
 0x398   :  { %v377_v13 = vmul.f32 %v433_v6, %v369_v11  ;;  %v437_v14 = vpack.c.bf16 %v384_v12, %v384_v12 }
 0x39a   :  { %v385_v15 = vadd.f32 %v434_v8, %v377_v13  ;;  %395 = vst.msk [vmem:[#allocation14] sm:$0xf] %vm394_vm2, %v437_v14 }
 0x39c   :  { %v438_v16 = vpack.c.bf16 %v385_v15, %v385_v15 }
 0x39e   :  { %396 = vst.msk [vmem:[#allocation14 + $0x4] sm:$0xf] %vm394_vm2, %v438_v16 }
 0x39f   :  { %684 = shalt.err (!%p681_p4)
}
 0x3a0   :  { %s685_s20 = scalar_lea.hbm %s896_s7, 128 }
 0x3a1   :  { %p686_p5 = scmp.ne.s32.totalorder %s896_s7, %s685_s20  ;;  %p689_p6 = scmp.lt.u32.totalorder %s685_s20, %s896_s7 }
 0x3a3   :  { %p691_p7 = pnand %p689_p6, %p686_p5 }
 0x3a5   :  { %694 = shalt.err (!%p691_p7)
}
 0x3a6   :  { %408 = dma.vmem_to_hbm [thread:$0]  %s403_s30, 128, %s896_s7, [#allocation4], %s707_s13, %s707_s13, %s708_s14  }
 0x3a7   :  { %703 = dma.done.wait [#allocation4], 128  }
 0x3a8   :  { %704 = vsyncadd [#allocation4], 4294967168 }
 0x3a9   :  { %412 = vsyncpa [#allocation3], 1 }
 0x3aa   :  { %413 = vsyncpa [#allocation6], 1 }
 0x3ab   :  { %414 = vsyncpa [#allocation9], 1 }
 0x3ac   :  { %415 = vsyncpa [#allocation12], 1 }
 0x3ad   :  { %416 = vsyncpa [#allocation4], 1 }

</bundles_post_ra>
